<compile_context>
chip_gen: v5e
topology: v5e:2x2
jax: 0.10.0
libtpu: 0.0.40
codegen_flags: <defaults>
</compile_context>

<pallas_src>
import numpy as np

import jax
import jax.numpy as jnp
from jax.experimental import pallas as pl
from jax.experimental.pallas import tpu as pltpu


# ---------------------------------------------------------------------------
# Static configuration of this StackDecoder instantiation.
# ---------------------------------------------------------------------------
IN_CH = 8                      # conv input channels (in_channels)
OUT_CH = 4                     # conv output channels (out_channels)
BYP_CH = IN_CH - OUT_CH        # bypass (down_tensor) channels; use_crop_concat=True
KSIZE = 3
PAD = 1
STRIDE = 1
UP_H, UP_W = 16, 16            # upsample_size
SRC_H, SRC_W = 8, 8            # spatial size of x before upsampling
BYP_H, BYP_W = 18, 18          # down_tensor spatial (cropped by 1 on each side)
BN_EPS = 1e-5

FW = UP_W + 2 * PAD            # 18: padded-frame row stride
FH = UP_H + 2 * PAD            # 18: padded-frame rows
FSIZE = FH * FW                # 324
RUN = UP_H * FW                # 288: conv output "run" length in frame coordinates
FRAME_LANES = 384              # scratch lanes: >= RUN + max tap offset, mult of 128
OUT_PIX = UP_H * UP_W          # 256
TAP_OFFS = tuple(dy * FW + dx for dy in range(KSIZE) for dx in range(KSIZE))

assert KSIZE - 1 == 2 * PAD and STRIDE == 1, "shift-conv trick assumes same/stride-1 conv"
assert (BYP_H, BYP_W) == (FH, FW), "crop-by-1 + re-pad-by-1 == interior-selection trick"
assert FRAME_LANES % 128 == 0 and FRAME_LANES >= RUN + TAP_OFFS[-1]


# ---------------------------------------------------------------------------
# Constant one-hot placement / selection matrices (built on host, folded as inputs).
# Every matrix's columns beyond the written region are zero, so the matmul stores
# fully (re)write the scratch frames each step -- no zero-init needed anywhere.
# ---------------------------------------------------------------------------
def _upsample_placement_matrix():
    """(SRC_H*SRC_W, FRAME_LANES): nearest upsample + pad-ring placement (ring/tail=0)."""
    m = np.zeros((SRC_H * SRC_W, FRAME_LANES), np.float32)
    for i in range(UP_H):
        si = (i * SRC_H) // UP_H            # F.interpolate(mode='nearest') row map
        for j in range(UP_W):
            sj = (j * SRC_W) // UP_W
            m[si * SRC_W + sj, (PAD + i) * FW + (PAD + j)] = 1.0
    return m


def _conv_run_placement_matrix():
    """(RUN, FRAME_LANES): conv-run coord r=i*FW+j -> frame lane (i+PAD)*FW+(j+PAD).

    Rows for "garbage" run positions (j >= UP_W) are all-zero, fusing the pad-ring
    masking with the +19-lane shift into one idle-MXU matmul."""
    m = np.zeros((RUN, FRAME_LANES), np.float32)
    for i in range(UP_H):
        for j in range(UP_W):
            m[i * FW + j, (PAD + i) * FW + (PAD + j)] = 1.0
    return m


def _bypass_placement_matrix():
    """(FSIZE, FRAME_LANES): identity on the 16x16 interior of the 18x18 frame.

    Cropping `down` by 1 px and re-padding by 1 px == zeroing its outer ring; the
    zero ring/tail columns make the store a full, aligned frame-row rewrite."""
    m = np.zeros((FSIZE, FRAME_LANES), np.float32)
    for i in range(UP_H):
        for j in range(UP_W):
            f = (PAD + i) * FW + (PAD + j)
            m[f, f] = 1.0
    return m


def _output_compaction_matrix():
    """(RUN, OUT_PIX): select valid run positions into dense 16x16 row-major output."""
    m = np.zeros((RUN, OUT_PIX), np.float32)
    for i in range(UP_H):
        for j in range(UP_W):
            m[i * FW + j, i * UP_W + j] = 1.0
    return m


# ---------------------------------------------------------------------------
# The fused Pallas kernel: MB batch elements per grid step.
# ---------------------------------------------------------------------------
def _make_stack_decoder_kernel(mb):
    def kernel(x_ref, down_ref, w1_ref, b1_ref, w2_ref, b2_ref,
               up_ref, place_ref, byp_ref, compact_ref, o_ref, frame1, frame2):
        """Fused StackDecoder forward for `mb` batch elements.

        x_ref:       (mb, IN_CH, SRC_H*SRC_W)   low-res input, NCHW flattened
        down_ref:    (mb, BYP_CH, FSIZE)        bypass tensor, NCHW flattened (18*18)
        w1/b1,w2/b2: folded conv+BN weights (OUT_CH, 9*IN_CH) / (OUT_CH, 1)
        up_ref:      (SRC_H*SRC_W, FRAME_LANES) upsample+placement one-hot matrix
        place_ref:   (RUN, FRAME_LANES)         conv-run -> frame placement (ring fused)
        byp_ref:     (FSIZE, FRAME_LANES)       bypass crop/re-pad placement
        compact_ref: (RUN, OUT_PIX)             frame-run -> dense output selection
        o_ref:       (mb, OUT_CH, OUT_PIX)      output, NCHW flattened (lane-dense)
        frame1/2:    (IN_CH, FRAME_LANES)       VMEM scratch padded frames
        """
        f32 = jnp.float32
        # Hoist all shared loads out of the per-element loop.
        w1 = w1_ref[...]
        b1 = b1_ref[...]
        w2 = w2_ref[...]
        b2 = b2_ref[...]
        up = up_ref[...]
        place = place_ref[...]
        byp = byp_ref[...]
        compact = compact_ref[...]

        def conv_bn_relu(frame_ref, w, b):
            # 3x3 stride-1 conv as ONE MXU matmul over 9 lane-shifted frame views.
            patches = jnp.concatenate(
                [frame_ref[:, o:o + RUN] for o in TAP_OFFS], axis=0)   # (9*IN_CH, RUN)
            acc = jnp.dot(w, patches, preferred_element_type=f32)      # (OUT_CH, RUN)
            return jnp.maximum(acc + b, 0.0)                           # folded BN + ReLU

        for m in range(mb):
            # -- nearest upsample + zero pad: one matmul, full-width aligned store --
            frame1[...] = jnp.dot(x_ref[m], up, preferred_element_type=f32)

            # -- conv1 + BN + ReLU --
            y1 = conv_bn_relu(frame1, w1, b1)                          # (OUT_CH, RUN)

            # -- crop_concat([conv1_out, bypass]) + zero pad, both via idle-MXU matmuls --
            frame2[0:OUT_CH, :] = jnp.dot(y1, place, preferred_element_type=f32)
            frame2[OUT_CH:IN_CH, :] = jnp.dot(down_ref[m], byp,
                                              preferred_element_type=f32)

            # -- conv2 + BN + ReLU --
            y2 = conv_bn_relu(frame2, w2, b2)                          # (OUT_CH, RUN)

            # -- compact frame-run (stride 18) to dense 16x16 rows: one aligned store --
            o_ref[m] = jnp.dot(y2, compact, preferred_element_type=f32)

    return kernel


# ---------------------------------------------------------------------------
# Micro-batch choice: amortize per-grid-step overhead while keeping >= 2 grid
# steps whenever B >= 2 so both TensorCores get work on dual-TC chips (v7x).
# ---------------------------------------------------------------------------
def _pick_microbatch(B):
    for mb in (8, 4, 2):
        if B % mb == 0 and B // mb >= 2:
            return mb
    return 1


# ---------------------------------------------------------------------------
# Wrapper: free reshapes only; the whole forward is one pallas_call.
# ---------------------------------------------------------------------------
@jax.jit
def stack_decoder_forward(x_nchw, down_nchw, w1, b1, w2, b2):
    """x: (B, IN_CH, 8, 8) NCHW, down: (B, BYP_CH, 18, 18) NCHW -> (B, OUT_CH, 16, 16)."""
    B = x_nchw.shape[0]
    mb = _pick_microbatch(B)
    x_flat = x_nchw.reshape(B, IN_CH, SRC_H * SRC_W)
    down_flat = down_nchw.reshape(B, BYP_CH, FSIZE)

    up = jnp.asarray(_upsample_placement_matrix())
    place = jnp.asarray(_conv_run_placement_matrix())
    byp = jnp.asarray(_bypass_placement_matrix())
    compact = jnp.asarray(_output_compaction_matrix())

    out = pl.pallas_call(
        _make_stack_decoder_kernel(mb),
        out_shape=jax.ShapeDtypeStruct((B, OUT_CH, OUT_PIX), jnp.float32),
        grid=(B // mb,),
        in_specs=[
            pl.BlockSpec((mb, IN_CH, SRC_H * SRC_W), lambda b: (b, 0, 0)),
            pl.BlockSpec((mb, BYP_CH, FSIZE), lambda b: (b, 0, 0)),
            pl.BlockSpec((OUT_CH, KSIZE * KSIZE * IN_CH), lambda b: (0, 0)),
            pl.BlockSpec((OUT_CH, 1), lambda b: (0, 0)),
            pl.BlockSpec((OUT_CH, KSIZE * KSIZE * IN_CH), lambda b: (0, 0)),
            pl.BlockSpec((OUT_CH, 1), lambda b: (0, 0)),
            pl.BlockSpec((SRC_H * SRC_W, FRAME_LANES), lambda b: (0, 0)),
            pl.BlockSpec((RUN, FRAME_LANES), lambda b: (0, 0)),
            pl.BlockSpec((FSIZE, FRAME_LANES), lambda b: (0, 0)),
            pl.BlockSpec((RUN, OUT_PIX), lambda b: (0, 0)),
        ],
        out_specs=pl.BlockSpec((mb, OUT_CH, OUT_PIX), lambda b: (b, 0, 0)),
        scratch_shapes=[pltpu.VMEM((IN_CH, FRAME_LANES), jnp.float32),
                        pltpu.VMEM((IN_CH, FRAME_LANES), jnp.float32)],
        compiler_params=pltpu.CompilerParams(dimension_semantics=("parallel",)),
    )(x_flat, down_flat, w1, b1, w2, b2, up, place, byp, compact)

    return out.reshape(B, OUT_CH, UP_H, UP_W)


# ---------------------------------------------------------------------------
# Parameters: raw Conv2d + BatchNorm2d params and their folded (kernel) form.
# ---------------------------------------------------------------------------
def make_convbnrelu_params(key):
    k1, k2, k3, k4, k5, k6 = jax.random.split(key, 6)
    return dict(
        w=0.1 * jax.random.normal(k1, (OUT_CH, IN_CH, KSIZE, KSIZE), jnp.float32),
        b=0.05 * jax.random.normal(k2, (OUT_CH,), jnp.float32),
        gamma=1.0 + 0.1 * jax.random.normal(k3, (OUT_CH,), jnp.float32),
        beta=0.05 * jax.random.normal(k4, (OUT_CH,), jnp.float32),
        mean=0.05 * jax.random.normal(k5, (OUT_CH,), jnp.float32),
        var=1.0 + 0.1 * jax.random.uniform(k6, (OUT_CH,), jnp.float32),
    )


def fold_convbnrelu_params(p):
    """Fold eval-mode BN into the conv: y = relu(conv_nobias(x; w*s) + bias')."""
    s = p["gamma"] / jnp.sqrt(p["var"] + BN_EPS)                   # (OUT_CH,)
    w_scaled = p["w"] * s[:, None, None, None]                     # OIHW
    # Row = C_out; column order (dy, dx, ci) matches the kernel's patch stacking.
    w_mat = jnp.transpose(w_scaled, (0, 2, 3, 1)).reshape(OUT_CH, KSIZE * KSIZE * IN_CH)
    bias = (p["beta"] + (p["b"] - p["mean"]) * s).reshape(OUT_CH, 1)
    return w_mat.astype(jnp.float32), bias.astype(jnp.float32)


# ---------------------------------------------------------------------------
# Pure-JAX/XLA reference (lax conv) for correctness check.
# ---------------------------------------------------------------------------
def _ref_conv_bn_relu(x, p):
    y = jax.lax.conv_general_dilated(
        x, p["w"], window_strides=(STRIDE, STRIDE),
        padding=[(PAD, PAD), (PAD, PAD)],
        dimension_numbers=("NCHW", "OIHW", "NCHW"),
        precision=jax.lax.Precision.HIGHEST)
    y = y + p["b"][None, :, None, None]
    s = (p["gamma"] / jnp.sqrt(p["var"] + BN_EPS))[None, :, None, None]
    y = (y - p["mean"][None, :, None, None]) * s + p["beta"][None, :, None, None]
    return jnp.maximum(y, 0.0)


def _ref_forward(x, down, p1, p2):
    rows = (jnp.arange(UP_H) * x.shape[2]) // UP_H
    cols = (jnp.arange(UP_W) * x.shape[3]) // UP_W
    xu = x[:, :, rows, :][:, :, :, cols]                    # F.interpolate(mode='nearest')
    y = _ref_conv_bn_relu(xu, p1)
    ch = (down.shape[2] - UP_H) // 2
    cw = (down.shape[3] - UP_W) // 2
    crop = down[:, :, ch:ch + UP_H, cw:cw + UP_W]
    y = jnp.concatenate([y, crop], axis=1)                  # torch.cat((upsampled, bypass), 1)
    y = _ref_conv_bn_relu(y, p2)
    return y


if __name__ == "__main__":
    B = 2
    key = jax.random.PRNGKey(0)
    kx, kd, kp1, kp2 = jax.random.split(key, 4)
    x = jax.random.normal(kx, (B, IN_CH, SRC_H, SRC_W), jnp.float32)       # NCHW
    down = jax.random.normal(kd, (B, BYP_CH, BYP_H, BYP_W), jnp.float32)   # NCHW

    p1 = make_convbnrelu_params(kp1)
    p2 = make_convbnrelu_params(kp2)
    w1, b1 = fold_convbnrelu_params(p1)
    w2, b2 = fold_convbnrelu_params(p2)

    out = stack_decoder_forward(x, down, w1, b1, w2, b2)
    out = jax.block_until_ready(out)

    ref = _ref_forward(x, down, p1, p2)
    assert out.shape == (B, OUT_CH, UP_H, UP_W), out.shape
    assert jnp.allclose(out, ref, atol=2e-2, rtol=2e-2), (
        "mismatch vs reference, max abs err = %f" % float(jnp.max(jnp.abs(out - ref))))

    print("KERNEL_OK")
</pallas_src>

<mosaic_0001>
module attributes {stable_mosaic.version = 11 : i64} {
  func.func @kernel(%arg0: i32, %arg1: memref<1x8x64xf32, #tpu.memory_space<vmem>>, %arg2: memref<1x4x324xf32, #tpu.memory_space<vmem>>, %arg3: memref<4x72xf32, #tpu.memory_space<vmem>>, %arg4: memref<4x1xf32, #tpu.memory_space<vmem>>, %arg5: memref<4x72xf32, #tpu.memory_space<vmem>>, %arg6: memref<4x1xf32, #tpu.memory_space<vmem>>, %arg7: memref<64x384xf32, #tpu.memory_space<vmem>>, %arg8: memref<288x384xf32, #tpu.memory_space<vmem>>, %arg9: memref<324x384xf32, #tpu.memory_space<vmem>>, %arg10: memref<288x256xf32, #tpu.memory_space<vmem>>, %arg11: memref<1x4x256xf32, #tpu.memory_space<vmem>>, %arg12: memref<8x384xf32, #tpu.memory_space<vmem>>, %arg13: memref<8x384xf32, #tpu.memory_space<vmem>>) attributes {dimension_semantics = [#tpu.dimension_semantics<parallel>], iteration_bounds = array<i64: 2>, scalar_prefetch = 0 : i64, scratch_operands = 2 : i64, tpu.core_type = #tpu.core_type<tc>, window_params = [{transform_indices = @transform_0, window_bounds = array<i64: 1, 8, 64>}, {transform_indices = @transform_1, window_bounds = array<i64: 1, 4, 324>}, {pipeline_mode = #tpu.pipeline_mode<synchronous>, transform_indices = @transform_2, window_bounds = array<i64: 4, 72>}, {pipeline_mode = #tpu.pipeline_mode<synchronous>, transform_indices = @transform_3, window_bounds = array<i64: 4, 1>}, {pipeline_mode = #tpu.pipeline_mode<synchronous>, transform_indices = @transform_4, window_bounds = array<i64: 4, 72>}, {pipeline_mode = #tpu.pipeline_mode<synchronous>, transform_indices = @transform_5, window_bounds = array<i64: 4, 1>}, {pipeline_mode = #tpu.pipeline_mode<synchronous>, transform_indices = @transform_6, window_bounds = array<i64: 64, 384>}, {pipeline_mode = #tpu.pipeline_mode<synchronous>, transform_indices = @transform_7, window_bounds = array<i64: 288, 384>}, {pipeline_mode = #tpu.pipeline_mode<synchronous>, transform_indices = @transform_8, window_bounds = array<i64: 324, 384>}, {pipeline_mode = #tpu.pipeline_mode<synchronous>, transform_indices = @transform_9, window_bounds = array<i64: 288, 256>}, {transform_indices = @transform_10, window_bounds = array<i64: 1, 4, 256>}]} {
    %c0 = arith.constant 0 : index
    %c0_0 = arith.constant 0 : index
    %0 = vector.load %arg3[%c0, %c0_0] : memref<4x72xf32, #tpu.memory_space<vmem>>, vector<4x72xf32>
    %c0_1 = arith.constant 0 : index
    %c0_2 = arith.constant 0 : index
    %1 = vector.load %arg4[%c0_1, %c0_2] : memref<4x1xf32, #tpu.memory_space<vmem>>, vector<4x1xf32>
    %c0_3 = arith.constant 0 : index
    %c0_4 = arith.constant 0 : index
    %2 = vector.load %arg5[%c0_3, %c0_4] : memref<4x72xf32, #tpu.memory_space<vmem>>, vector<4x72xf32>
    %c0_5 = arith.constant 0 : index
    %c0_6 = arith.constant 0 : index
    %3 = vector.load %arg6[%c0_5, %c0_6] : memref<4x1xf32, #tpu.memory_space<vmem>>, vector<4x1xf32>
    %c0_7 = arith.constant 0 : index
    %c0_8 = arith.constant 0 : index
    %4 = vector.load %arg7[%c0_7, %c0_8] : memref<64x384xf32, #tpu.memory_space<vmem>>, vector<64x384xf32>
    %c0_9 = arith.constant 0 : index
    %c0_10 = arith.constant 0 : index
    %5 = vector.load %arg8[%c0_9, %c0_10] : memref<288x384xf32, #tpu.memory_space<vmem>>, vector<288x384xf32>
    %c0_11 = arith.constant 0 : index
    %c0_12 = arith.constant 0 : index
    %6 = vector.load %arg9[%c0_11, %c0_12] : memref<324x384xf32, #tpu.memory_space<vmem>>, vector<324x384xf32>
    %c0_13 = arith.constant 0 : index
    %c0_14 = arith.constant 0 : index
    %7 = vector.load %arg10[%c0_13, %c0_14] : memref<288x256xf32, #tpu.memory_space<vmem>>, vector<288x256xf32>
    %c0_15 = arith.constant 0 : index
    %c0_16 = arith.constant 0 : index
    %c0_17 = arith.constant 0 : index
    %8 = vector.load %arg1[%c0_15, %c0_16, %c0_17] : memref<1x8x64xf32, #tpu.memory_space<vmem>>, vector<1x8x64xf32>
    %9 = vector.shape_cast %8 : vector<1x8x64xf32> to vector<8x64xf32>
    %cst = arith.constant dense<0.000000e+00> : vector<8x384xf32>
    %10 = tpu.matmul %9, %4, %cst {dimension_numbers = #tpu.dot_dimension_numbers<[1], [0], [0], [1], [0, 0, 1, 1], [], []>} : vector<8x64xf32>, vector<64x384xf32>, vector<8x384xf32> -> vector<8x384xf32>
    %c0_18 = arith.constant 0 : index
    %c0_19 = arith.constant 0 : index
    %11 = vector.load %arg12[%c0_18, %c0_19] : memref<8x384xf32, #tpu.memory_space<vmem>>, vector<8x384xf32>
    tpu.vector_store %arg12[%c0_18, %c0_19], %10 {strides = array<i32>} : memref<8x384xf32, #tpu.memory_space<vmem>>, vector<8x384xf32>,
    %c0_20 = arith.constant 0 : index
    %c0_21 = arith.constant 0 : index
    %12 = vector.load %arg12[%c0_20, %c0_21] : memref<8x384xf32, #tpu.memory_space<vmem>>, vector<8x288xf32>
    %c0_22 = arith.constant 0 : index
    %c1 = arith.constant 1 : index
    %13 = vector.load %arg12[%c0_22, %c1] : memref<8x384xf32, #tpu.memory_space<vmem>>, vector<8x288xf32>
    %c0_23 = arith.constant 0 : index
    %c2 = arith.constant 2 : index
    %14 = vector.load %arg12[%c0_23, %c2] : memref<8x384xf32, #tpu.memory_space<vmem>>, vector<8x288xf32>
    %c0_24 = arith.constant 0 : index
    %c18 = arith.constant 18 : index
    %15 = vector.load %arg12[%c0_24, %c18] : memref<8x384xf32, #tpu.memory_space<vmem>>, vector<8x288xf32>
    %c0_25 = arith.constant 0 : index
    %c19 = arith.constant 19 : index
    %16 = vector.load %arg12[%c0_25, %c19] : memref<8x384xf32, #tpu.memory_space<vmem>>, vector<8x288xf32>
    %c0_26 = arith.constant 0 : index
    %c20 = arith.constant 20 : index
    %17 = vector.load %arg12[%c0_26, %c20] : memref<8x384xf32, #tpu.memory_space<vmem>>, vector<8x288xf32>
    %c0_27 = arith.constant 0 : index
    %c36 = arith.constant 36 : index
    %18 = vector.load %arg12[%c0_27, %c36] : memref<8x384xf32, #tpu.memory_space<vmem>>, vector<8x288xf32>
    %c0_28 = arith.constant 0 : index
    %c37 = arith.constant 37 : index
    %19 = vector.load %arg12[%c0_28, %c37] : memref<8x384xf32, #tpu.memory_space<vmem>>, vector<8x288xf32>
    %c0_29 = arith.constant 0 : index
    %c38 = arith.constant 38 : index
    %20 = vector.load %arg12[%c0_29, %c38] : memref<8x384xf32, #tpu.memory_space<vmem>>, vector<8x288xf32>
    %21 = tpu.concatenate %12, %13, %14, %15, %16, %17, %18, %19, %20 in 0 : vector<8x288xf32>, vector<8x288xf32>, vector<8x288xf32>, vector<8x288xf32>, vector<8x288xf32>, vector<8x288xf32>, vector<8x288xf32>, vector<8x288xf32>, vector<8x288xf32> -> vector<72x288xf32>
    %cst_30 = arith.constant dense<0.000000e+00> : vector<4x288xf32>
    %22 = tpu.matmul %0, %21, %cst_30 {dimension_numbers = #tpu.dot_dimension_numbers<[1], [0], [0], [1], [0, 0, 1, 1], [], []>} : vector<4x72xf32>, vector<72x288xf32>, vector<4x288xf32> -> vector<4x288xf32>
    %23 = vector.broadcast %1 : vector<4x1xf32> to vector<4x288xf32>
    %24 = arith.addf %22, %23 : vector<4x288xf32>
    %cst_31 = arith.constant 0.000000e+00 : f32
    %25 = vector.broadcast %cst_31 : f32 to vector<4x288xf32>
    %26 = arith.maximumf %24, %25 : vector<4x288xf32>
    %cst_32 = arith.constant dense<0.000000e+00> : vector<4x384xf32>
    %27 = tpu.matmul %26, %5, %cst_32 {dimension_numbers = #tpu.dot_dimension_numbers<[1], [0], [0], [1], [0, 0, 1, 1], [], []>} : vector<4x288xf32>, vector<288x384xf32>, vector<4x384xf32> -> vector<4x384xf32>
    %c0_33 = arith.constant 0 : index
    %c0_34 = arith.constant 0 : index
    %28 = vector.load %arg13[%c0_33, %c0_34] : memref<8x384xf32, #tpu.memory_space<vmem>>, vector<4x384xf32>
    tpu.vector_store %arg13[%c0_33, %c0_34], %27 {strides = array<i32>} : memref<8x384xf32, #tpu.memory_space<vmem>>, vector<4x384xf32>,
    %c0_35 = arith.constant 0 : index
    %c0_36 = arith.constant 0 : index
    %c0_37 = arith.constant 0 : index
    %29 = vector.load %arg2[%c0_35, %c0_36, %c0_37] : memref<1x4x324xf32, #tpu.memory_space<vmem>>, vector<1x4x324xf32>
    %30 = vector.shape_cast %29 : vector<1x4x324xf32> to vector<4x324xf32>
    %cst_38 = arith.constant dense<0.000000e+00> : vector<4x384xf32>
    %31 = tpu.matmul %30, %6, %cst_38 {dimension_numbers = #tpu.dot_dimension_numbers<[1], [0], [0], [1], [0, 0, 1, 1], [], []>} : vector<4x324xf32>, vector<324x384xf32>, vector<4x384xf32> -> vector<4x384xf32>
    %c4 = arith.constant 4 : index
    %c0_39 = arith.constant 0 : index
    %32 = vector.load %arg13[%c4, %c0_39] : memref<8x384xf32, #tpu.memory_space<vmem>>, vector<4x384xf32>
    tpu.vector_store %arg13[%c4, %c0_39], %31 {strides = array<i32>} : memref<8x384xf32, #tpu.memory_space<vmem>>, vector<4x384xf32>,
    %c0_40 = arith.constant 0 : index
    %c0_41 = arith.constant 0 : index
    %33 = vector.load %arg13[%c0_40, %c0_41] : memref<8x384xf32, #tpu.memory_space<vmem>>, vector<8x288xf32>
    %c0_42 = arith.constant 0 : index
    %c1_43 = arith.constant 1 : index
    %34 = vector.load %arg13[%c0_42, %c1_43] : memref<8x384xf32, #tpu.memory_space<vmem>>, vector<8x288xf32>
    %c0_44 = arith.constant 0 : index
    %c2_45 = arith.constant 2 : index
    %35 = vector.load %arg13[%c0_44, %c2_45] : memref<8x384xf32, #tpu.memory_space<vmem>>, vector<8x288xf32>
    %c0_46 = arith.constant 0 : index
    %c18_47 = arith.constant 18 : index
    %36 = vector.load %arg13[%c0_46, %c18_47] : memref<8x384xf32, #tpu.memory_space<vmem>>, vector<8x288xf32>
    %c0_48 = arith.constant 0 : index
    %c19_49 = arith.constant 19 : index
    %37 = vector.load %arg13[%c0_48, %c19_49] : memref<8x384xf32, #tpu.memory_space<vmem>>, vector<8x288xf32>
    %c0_50 = arith.constant 0 : index
    %c20_51 = arith.constant 20 : index
    %38 = vector.load %arg13[%c0_50, %c20_51] : memref<8x384xf32, #tpu.memory_space<vmem>>, vector<8x288xf32>
    %c0_52 = arith.constant 0 : index
    %c36_53 = arith.constant 36 : index
    %39 = vector.load %arg13[%c0_52, %c36_53] : memref<8x384xf32, #tpu.memory_space<vmem>>, vector<8x288xf32>
    %c0_54 = arith.constant 0 : index
    %c37_55 = arith.constant 37 : index
    %40 = vector.load %arg13[%c0_54, %c37_55] : memref<8x384xf32, #tpu.memory_space<vmem>>, vector<8x288xf32>
    %c0_56 = arith.constant 0 : index
    %c38_57 = arith.constant 38 : index
    %41 = vector.load %arg13[%c0_56, %c38_57] : memref<8x384xf32, #tpu.memory_space<vmem>>, vector<8x288xf32>
    %42 = tpu.concatenate %33, %34, %35, %36, %37, %38, %39, %40, %41 in 0 : vector<8x288xf32>, vector<8x288xf32>, vector<8x288xf32>, vector<8x288xf32>, vector<8x288xf32>, vector<8x288xf32>, vector<8x288xf32>, vector<8x288xf32>, vector<8x288xf32> -> vector<72x288xf32>
    %cst_58 = arith.constant dense<0.000000e+00> : vector<4x288xf32>
    %43 = tpu.matmul %2, %42, %cst_58 {dimension_numbers = #tpu.dot_dimension_numbers<[1], [0], [0], [1], [0, 0, 1, 1], [], []>} : vector<4x72xf32>, vector<72x288xf32>, vector<4x288xf32> -> vector<4x288xf32>
    %44 = vector.broadcast %3 : vector<4x1xf32> to vector<4x288xf32>
    %45 = arith.addf %43, %44 : vector<4x288xf32>
    %cst_59 = arith.constant 0.000000e+00 : f32
    %46 = vector.broadcast %cst_59 : f32 to vector<4x288xf32>
    %47 = arith.maximumf %45, %46 : vector<4x288xf32>
    %cst_60 = arith.constant dense<0.000000e+00> : vector<4x256xf32>
    %48 = tpu.matmul %47, %7, %cst_60 {dimension_numbers = #tpu.dot_dimension_numbers<[1], [0], [0], [1], [0, 0, 1, 1], [], []>} : vector<4x288xf32>, vector<288x256xf32>, vector<4x256xf32> -> vector<4x256xf32>
    %c0_61 = arith.constant 0 : index
    %c0_62 = arith.constant 0 : index
    %c0_63 = arith.constant 0 : index
    %49 = vector.load %arg11[%c0_61, %c0_62, %c0_63] : memref<1x4x256xf32, #tpu.memory_space<vmem>>, vector<1x4x256xf32>
    %50 = vector.shape_cast %49 : vector<1x4x256xf32> to vector<4x256xf32>
    %51 = vector.shape_cast %48 : vector<4x256xf32> to vector<1x4x256xf32>
    tpu.vector_store %arg11[%c0_61, %c0_62, %c0_63], %51 {strides = array<i32>} : memref<1x4x256xf32, #tpu.memory_space<vmem>>, vector<1x4x256xf32>,
    return
  }
  func.func @transform_0(%arg0: i32) -> (i32, i32, i32) {
    %c0_i32 = arith.constant 0 : i32
    %c0_i32_0 = arith.constant 0 : i32
    %c0_i32_1 = arith.constant 0 : i32
    return %arg0, %c0_i32, %c0_i32_0 : i32, i32, i32
  }
  func.func @transform_1(%arg0: i32) -> (i32, i32, i32) {
    %c0_i32 = arith.constant 0 : i32
    %c0_i32_0 = arith.constant 0 : i32
    %c0_i32_1 = arith.constant 0 : i32
    return %arg0, %c0_i32, %c0_i32_0 : i32, i32, i32
  }
  func.func @transform_2(%arg0: i32) -> (i32, i32) {
    %c0_i32 = arith.constant 0 : i32
    %c0_i32_0 = arith.constant 0 : i32
    %c0_i32_1 = arith.constant 0 : i32
    return %c0_i32, %c0_i32_0 : i32, i32
  }
  func.func @transform_3(%arg0: i32) -> (i32, i32) {
    %c0_i32 = arith.constant 0 : i32
    %c0_i32_0 = arith.constant 0 : i32
    %c0_i32_1 = arith.constant 0 : i32
    return %c0_i32, %c0_i32_0 : i32, i32
  }
  func.func @transform_4(%arg0: i32) -> (i32, i32) {
    %c0_i32 = arith.constant 0 : i32
    %c0_i32_0 = arith.constant 0 : i32
    %c0_i32_1 = arith.constant 0 : i32
    return %c0_i32, %c0_i32_0 : i32, i32
  }
  func.func @transform_5(%arg0: i32) -> (i32, i32) {
    %c0_i32 = arith.constant 0 : i32
    %c0_i32_0 = arith.constant 0 : i32
    %c0_i32_1 = arith.constant 0 : i32
    return %c0_i32, %c0_i32_0 : i32, i32
  }
  func.func @transform_6(%arg0: i32) -> (i32, i32) {
    %c0_i32 = arith.constant 0 : i32
    %c0_i32_0 = arith.constant 0 : i32
    %c0_i32_1 = arith.constant 0 : i32
    return %c0_i32, %c0_i32_0 : i32, i32
  }
  func.func @transform_7(%arg0: i32) -> (i32, i32) {
    %c0_i32 = arith.constant 0 : i32
    %c0_i32_0 = arith.constant 0 : i32
    %c0_i32_1 = arith.constant 0 : i32
    return %c0_i32, %c0_i32_0 : i32, i32
  }
  func.func @transform_8(%arg0: i32) -> (i32, i32) {
    %c0_i32 = arith.constant 0 : i32
    %c0_i32_0 = arith.constant 0 : i32
    %c0_i32_1 = arith.constant 0 : i32
    return %c0_i32, %c0_i32_0 : i32, i32
  }
  func.func @transform_9(%arg0: i32) -> (i32, i32) {
    %c0_i32 = arith.constant 0 : i32
    %c0_i32_0 = arith.constant 0 : i32
    %c0_i32_1 = arith.constant 0 : i32
    return %c0_i32, %c0_i32_0 : i32, i32
  }
  func.func @transform_10(%arg0: i32) -> (i32, i32, i32) {
    %c0_i32 = arith.constant 0 : i32
    %c0_i32_0 = arith.constant 0 : i32
    %c0_i32_1 = arith.constant 0 : i32
    return %arg0, %c0_i32, %c0_i32_0 : i32, i32, i32
  }
}

</mosaic_0001>

<bundles_post_ra>
// kernel: stack_decoder_forward.1
= control target key start
LH: loop header
LB: loop body
LE: loop exit
PB: predicated region body
PF: predicated region fallthrough
CT: control target
= control target key end

     0   :  { %15 = vsyncpa [#allocation5], 0  ;;  %s2560_s0 = inlined_call_operand.vmem [shape: f32[2,8,64], index: 0, kind: input, shape index: {}]   ;;  %s2561_s1 = inlined_call_operand.vmem [shape: f32[2,4,324], index: 1, kind: input, shape index: {}]   ;;  %s2562_s2 = inlined_call_operand.vmem [shape: f32[4,72], index: 2, kind: input, shape index: {}]   ;;  %s2563_s3 = inlined_call_operand.vmem [shape: f32[4,1], index: 3, kind: input, shape index: {}]   ;;  %s2564_s4 = inlined_call_operand.vmem [shape: f32[4,72], index: 4, kind: input, shape index: {}]   ;;  %s2565_s5 = inlined_call_operand.vmem [shape: f32[4,1], index: 5, kind: input, shape index: {}]   ;;  %s2566_s6 = inlined_call_operand.vmem [shape: f32[64,384], index: 6, kind: input, shape index: {}]   ;;  %s2567_s7 = inlined_call_operand.hbm [shape: f32[288,384], index: 7, kind: input, shape index: {}]   ;;  %s2568_s8 = inlined_call_operand.hbm [shape: f32[324,384], index: 8, kind: input, shape index: {}]   ;;  %s2569_s9 = inlined_call_operand.hbm [shape: f32[288,256], index: 9, kind: input, shape index: {}]   ;;  %s2570_s10 = inlined_call_operand.vmem [shape: f32[2,4,256], index: 10, kind: output, shape index: {}]  }
   0x1   :  { %16 = vsyncpa [#allocation7], 0  ;;  %s2146_s13 = smov 0  }
   0x2 LB: > { %s2152_s14 = sadd.s32 4294967295, %s2073_s13   ;;  %p1798_p0 = scmp.ge.s32.totalorder %s2073_s13, 1  ;;  %s2073_s13 = sphi %s2146_s13, %s22_s13  }
   0x3   : > { %p273_p1 = scmp.lt.s32.totalorder %s2073_s13, 3  ;;  %p1857_p2 = scmp.eq.s32.totalorder %s2152_s14, 0 }
   0x4   : > { %s313_s17 = sshll.u32 %s2568_s8, 4  ;;  %s299_s21 = sshll.u32 %s2567_s7, 4  ;;  %s314_s17 = int_to_ptr.hbm [resolvable:$true] %s313_s17  ;;  %s300_s21 = int_to_ptr.hbm [resolvable:$true] %s299_s21 }
   0x5   : > { %p2160_p3 = pnand %p1798_p0, %p273_p1  ;;  %s2075_s22 = smov [#allocation6]  }
   0x6   : > { %s315_s23 = sshll.u32 %s2075_s22, 4  ;;  %s2076_s25 = smov [#allocation4]   ;;  %s316_s23 = int_to_ptr.vmem [resolvable:$true] %s315_s23 }
   0x7   : > { %p1847_p4 = pneg %p2160_p3  ;;  %s301_s26 = sshll.u32 %s2076_s25, 4  ;;  %s302_s26 = int_to_ptr.vmem [resolvable:$true] %s301_s26 }
   0x8   : > { %s327_s29 = sshll.u32 %s2569_s9, 4  ;;  %s2077_s30 = smov 384   ;;  %s328_s29 = int_to_ptr.hbm [resolvable:$true] %s327_s29 }
   0x9   : > { %p2171_p5 = pnand %p1857_p2, %p1847_p4  ;;  %s2078_s11 = smov 24  }
   0xa   : > { %s2079_s12 = smov [#allocation8]   ;;  %s2080_s16 = smov 256  }
   0xb   : > { %1853 = dma.hbm_to_vmem [thread:$0]  (!%p2171_p5), %s314_s17, 15744, %s316_s23, [#allocation7], %s2077_s30, %s2077_s30, %s2078_s11  }
   0xc   : > { %1850 = dma.hbm_to_vmem [thread:$0]  (!%p2171_p5), %s300_s21, 13824, %s302_s26, [#allocation5], %s2077_s30, %s2077_s30, %s2078_s11  }
   0xd   : > { %s329_s15 = sshll.u32 %s2079_s12, 4  ;;  %s2081_s19 = smov 16   ;;  %s330_s15 = int_to_ptr.vmem [resolvable:$true] %s329_s15 }
   0xe   : > { %1856 = dma.hbm_to_vmem [thread:$0]  (!%p2171_p5), %s328_s29, 9216, %s330_s15, [#allocation7], %s2080_s16, %s2080_s16, %s2081_s19  }
   0xf   : > { %360 = sbr.rel (%p2160_p3) target bundleno = 1103 (0x44f), region = 60 }
  0x14   : > { %2064 = dma.done.wait (%p1857_p2), [#allocation5], 13824  }
  0x15   : > { %2066 = vsyncadd (%p1857_p2), [#allocation5], 4294953472 }
  0x16   : > { %2068 = dma.done.wait (%p1857_p2), [#allocation7], 24960  }
  0x17   : > { %2070 = vsyncadd (%p1857_p2), [#allocation7], 4294942336  ;;  %p413_p6 = scmp.lt.s32.totalorder %s2152_s14, 1  ;;  %v452_v0 = vld [vmem:[%s2566_s6 + $0xa8] sm:$0xff]  ;;  %v453_v1 = vld [vmem:[%s2566_s6 + $0xb0] sm:$0xff]  ;;  %vm759_vm0 = vcmask 523264  }
  0x18   : > { %v449_v2 = vld [vmem:[%s2566_s6 + $0x90] sm:$0xff]  ;;  %771 = vmatpush.msra.mxu0 %v452_v0  ;;  %791 = vmatpush.msra.mxu1 %v453_v1  ;;  %v450_v3 = vld [vmem:[%s2566_s6 + $0x98] sm:$0xff]  ;;  %v447_v5 = vld [vmem:[%s2566_s6 + $0x80] sm:$0xff]  ;;  %s2082_s22 = smov 109   ;;  %s2083_s23 = smov 92   ;;  %vm922_vm1 = vcmask 736256  }
  0x19   : > { %s2574_s14 = smov (!%p413_p6, %s2152_s14), 1  ;;  %v446_v4 = vld [vmem:[%s2566_s6 + $0x78] sm:$0xff]  ;;  %v443_v6 = vld [vmem:[%s2566_s6 + $0x60] sm:$0xff]  ;;  %v444_v7 = vld [vmem:[%s2566_s6 + $0x68] sm:$0xff]  ;;  %s2086_s25 = smov 108   ;;  %vm910_vm2 = vcmask 744448  }
  0x1a   : > { %s1834_s17 = smul.u32 12, %s2574_s14  ;;  %772 = vmatpush.msra.mxu0 %v449_v2  ;;  %792 = vmatpush.msra.mxu1 %v450_v3  ;;  %v440_v8 = vld [vmem:[%s2566_s6 + $0x48] sm:$0xff]  ;;  %v441_v10 = vld [vmem:[%s2566_s6 + $0x50] sm:$0xff]  ;;  %v454_v12 = vld [vmem:[%s2566_s6 + $0xb8] sm:$0xff]  ;;  %s1807_s26 = sshll.u32 %s2574_s14, 3  ;;  %vm898_vm3 = vcmask 752640  }
  0x1b   : > { %v451_v13 = vld [vmem:[%s2566_s6 + $0xa0] sm:$0xff]  ;;  %v437_v14 = vld [vmem:[%s2566_s6 + $0x30] sm:$0xff]  ;;  %v438_v15 = vld [vmem:[%s2566_s6 + $0x38] sm:$0xff]  ;;  %811 = vmatpush.msra.mxu2 %v454_v12  ;;  %s416_s24 = scalar_lea.vmem %s2560_s0, %s1807_s26  ;;  %s2087_s27 = smov 91   ;;  %v2090_v49 = vmov 0   ;;  %vm886_vm4 = vcmask 883712  }
  0x1c   : > { %s421_s15 = scalar_lea.vmem %s2561_s1, %s1834_s17  ;;  %773 = vmatpush.msra.mxu0 %v446_v4  ;;  %793 = vmatpush.msra.mxu1 %v447_v5  ;;  %v448_v16 = vld [vmem:[%s2566_s6 + $0x88] sm:$0xff]  ;;  %v434_v17 = vld [vmem:[%s2566_s6 + $0x18] sm:$0xff]  ;;  %v435_v18 = vld [vmem:[%s2566_s6 + $0x20] sm:$0xff]  ;;  %s2085_s17 = smov 110   ;;  %vm874_vm5 = vcmask 891904   ;;  %vm862_vm6 = vcmask 900096  }
  0x1d   : > { %v1187_v9 = vld [vmem:[%s421_s15] sm:$0xff]  ;;  %v1188_v11 = vld [vmem:[%s421_s15 + $0x8] sm:$0xf]  ;;  %812 = vmatpush.msra.mxu2 %v451_v13  ;;  %v445_v19 = vld [vmem:[%s2566_s6 + $0x70] sm:$0xff]  ;;  %s2088_s28 = smov 127   ;;  %s2089_s29 = smov 126   ;;  %1927 = vset.pattern.permute.xlu1 %v2090_v49 }
  0x1e   : > { %1191 = vst [vmem:[#allocation1] ss:$2 sm:$0xff] %v1187_v9  ;;  %774 = vmatpush.msra.mxu0 %v443_v6  ;;  %794 = vmatpush.msra.mxu1 %v444_v7  ;;  %v431_v20 = vld [vmem:[%s2566_s6] sm:$0xff]  ;;  %v432_v21 = vld [vmem:[%s2566_s6 + $0x8] sm:$0xff]  ;;  %v442_v23 = vld [vmem:[%s2566_s6 + $0x58] sm:$0xff]  ;;  %vm850_vm7 = vcmask 1031168  }
  0x1f   : > { %1193 = vst [vmem:[#allocation1 + $0x10] ss:$2 sm:$0xff] %v1188_v11  ;;  %813 = vmatpush.msra.mxu2 %v448_v16  ;;  %v758_v22 = vld [vmem:[%s416_s24] sm:$0xff]  ;;  %v436_v25 = vld [vmem:[%s2566_s6 + $0x28] sm:$0xff]  ;;  %v433_v26 = vld [vmem:[%s2566_s6 + $0x10] sm:$0xff]  ;;  %s2084_s24 = smov 90   ;;  %1968 = vset.pattern.permute.xlu0 %v2090_v49 }
  0x20   : > { %775 = vmatpush.msra.mxu0 %v440_v8  ;;  %795 = vmatpush.msra.mxu1 %v441_v10  ;;  %v439_v24 = vld [vmem:[%s2566_s6 + $0x40] sm:$0xff]  ;;  %v500_v54 = vld [vmem:[#allocation4 + $0x168] sm:$0xff]  ;;  %v497_v55 = vld [vmem:[#allocation4 + $0x150] sm:$0xff]  ;;  %vm838_vm8 = vcmask 1039360   ;;  %vm933_vm9 = vcmask 588800   ;;  %vm1000_vm10 = vcmask 261120  }
  0x21   : > { %814 = vmatpush.msra.mxu2 %v445_v19  ;;  %v428_v50 = vld [vmem:[%s2563_s3] sm:$0xf]  ;;  %v494_v60 = vld [vmem:[#allocation4 + $0x138] sm:$0xff]  ;;  %v488_v5 = vld [vmem:[#allocation4 + $0x108] sm:$0xff]  ;;  %vm1202_vm11 = vcmask 1043456   ;;  %vm1199_vm12 = vcmask 556032  }
  0x22   : > { %776 = vmatpush.msra.mxu0 %v437_v14  ;;  %796 = vmatpush.msra.mxu1 %v438_v15  ;;  %v491_v1 = vld [vmem:[#allocation4 + $0x120] sm:$0xff]  ;;  %v485_v7 = vld [vmem:[#allocation4 + $0xf0] sm:$0xff]  ;;  %v548_v14 = vld [vmem:[#allocation4 + $0x2e8] sm:$0xff] }
  0x23   : > { %815 = vmatpush.msra.mxu2 %v442_v23  ;;  %v2367_v12 = vld [vmem:[%s2562_s2] sm:$0xf]  ;;  %v482_v15 = vld [vmem:[#allocation4 + $0xd8] sm:$0xff] }
  0x24   : > { %777 = vmatpush.msra.mxu0 %v434_v17  ;;  %797 = vmatpush.msra.mxu1 %v435_v18  ;;  %v545_v17 = vld [vmem:[#allocation4 + $0x2d0] sm:$0xff]  ;;  %v479_v18 = vld [vmem:[#allocation4 + $0xc0] sm:$0xff] }
  0x25   : > { %816 = vmatpush.msra.mxu2 %v439_v24  ;;  %v495_v49 = vld [vmem:[#allocation4 + $0x140] sm:$0xff] }
  0x26   : > { %778 = vmatpush.msra.mxu0 %v431_v20  ;;  %798 = vmatpush.msra.mxu1 %v432_v21  ;;  %v542_v20 = vld [vmem:[#allocation4 + $0x2b8] sm:$0xff]  ;;  %v476_v21 = vld [vmem:[#allocation4 + $0xa8] sm:$0xff] }
  0x27   : > { %1811 = vmatmul.msk.f32.vlgmr.msra.gmra.mxu0 %vm759_vm0, %v758_v22  ;;  %1812 = vmatmul.msk.f32.vlgmr.msra.gmra.mxu1 %vm759_vm0, %v758_v22 }
  0x28   : > { %817 = vmatpush.msra.mxu2 %v436_v25  ;;  %v473_v25 = vld [vmem:[#allocation4 + $0x90] sm:$0xff] }
  0x2a   : > { %818 = vmatpush.msra.mxu2 %v433_v26 }
  0x2b   : > { %1813 = vmatmul.msk.f32.vlgmr.msra.gmra.mxu2 %vm759_vm0, %v758_v22  ;;  %v539_v22 = vld [vmem:[#allocation4 + $0x2a0] sm:$0xff] }
  0x2c   : > { %1004 = vmatpush.msrb.mxu2 %v500_v54  ;;  %v515_v54 = vld [vmem:[#allocation4 + $0x1e0] sm:$0xff] }
  0x2e   : > { %1005 = vmatpush.msrb.mxu2 %v497_v55  ;;  %v489_v55 = vld [vmem:[#allocation4 + $0x110] sm:$0xff] }
  0x30   : > { %1006 = vmatpush.msrb.mxu2 %v494_v60  ;;  %v546_v60 = vld [vmem:[#allocation4 + $0x2d8] sm:$0xff] }
  0x32   : > { %1007 = vmatpush.msrb.mxu2 %v491_v1  ;;  %v480_v1 = vld [vmem:[#allocation4 + $0xc8] sm:$0xff] }
  0x34   : > { %1008 = vmatpush.msrb.mxu2 %v488_v5  ;;  %v537_v5 = vld [vmem:[#allocation4 + $0x290] sm:$0xff] }
  0x36   : > { %1009 = vmatpush.msrb.mxu2 %v485_v7  ;;  %v474_v7 = vld [vmem:[#allocation4 + $0x98] sm:$0xff] }
  0x38   : > { %1010 = vmatpush.msrb.mxu2 %v482_v15  ;;  %v465_v15 = vld [vmem:[#allocation4 + $0x50] sm:$0xff] }
  0x3a   : > { %1011 = vmatpush.msrb.mxu2 %v479_v18  ;;  %v525_v18 = vld [vmem:[#allocation4 + $0x230] sm:$0xff] }
  0x3c   : > { %1012 = vmatpush.msrb.mxu2 %v476_v21  ;;  %v490_v21 = vld [vmem:[#allocation4 + $0x118] sm:$0xff] }
  0x3e   : > { %1013 = vmatpush.msrb.mxu2 %v473_v25  ;;  %v487_v25 = vld [vmem:[#allocation4 + $0x100] sm:$0xff] }
  0xa4   : > { %v2280_v27 = vpop.f32.mrf.mxu0  ;;  %v2282_v28 = vpop.f32.mrf.mxu1 }
  0xa5   : > { %v1907_v29 = vpack.i.bf16 %v2282_v28, %v2280_v27 }
  0xa7   : > { %1908 = vrot.lane.b32.xlu2 %v1907_v29, %s2082_s22  ;;  %1898 = vrot.lane.b32.xlu1 %v1907_v29, %s2083_s23 }
  0xa8   : > { %1888 = vrot.lane.b32.xlu0 %v1907_v29, %s2084_s24 }
  0xae   : > { %v2292_v30 = vpop.f32.mrf.mxu2 }
  0xaf   : > { %1913 = vrot.lane.b32.xlu2 %v1907_v29, %s2085_s17  ;;  %1903 = vrot.lane.b32.xlu1 %v1907_v29, %s2086_s25 }
  0xb0   : > { %1893 = vrot.lane.b32.xlu0 %v1907_v29, %s2087_s27 }
  0xb7   : > { %1923 = vrot.lane.b32.xlu1 %v1907_v29, %s2088_s28  ;;  %920 = vrot.lane.b32.xlu2 %v2292_v30, %s2084_s24 }
  0xb8   : > { %1918 = vrot.lane.b32.xlu0 %v1907_v29, %s2089_s29 }
  0xbf   : > { %896 = vrot.lane.b32.xlu1 %v2292_v30, %s2083_s23  ;;  %884 = vrot.lane.b32.xlu2 %v2292_v30, %s2086_s25 }
  0xc0   : > { %908 = vrot.lane.b32.xlu0 %v2292_v30, %s2087_s27 }
  0xc7   : > { %860 = vrot.lane.b32.xlu1 %v2292_v30, %s2085_s17  ;;  %848 = vrot.lane.b32.xlu2 %v2292_v30, %s2089_s29 }
  0xc8   : > { %872 = vrot.lane.b32.xlu0 %v2292_v30, %s2082_s22 }
  0xcf   : > { %930 = vperm.xlu1 %1927, %v428_v50   ;;  %v554_v50 = vld [vmem:[#allocation4 + $0x318] sm:$0xff] }
  0xd0   : > { %836 = vrot.lane.b32.xlu0 %v2292_v30, %s2088_s28 }
 0x101   : > { %v2312_v31 = vpop.permute.xlu2 %1908 }
 0x102   : > { %v1911_v51 = vunpack.i.h.bf16 %v2312_v31  ;;  %v1910_v52 = vunpack.i.l.bf16 %v2312_v31 }
 0x104   : > { %v875_v0 = vsel %vm874_vm5, %v1910_v52, %v1911_v51  ;;  %v561_v52 = vld [vmem:[#allocation4 + $0x350] sm:$0xff] }
 0x109   : > { %v2314_v32 = vpop.permute.xlu2 %1913 }
 0x10a   : > { %v1916_v56 = vunpack.i.h.bf16 %v2314_v32  ;;  %v1915_v57 = vunpack.i.l.bf16 %v2314_v32 }
 0x10c   : > { %v863_v4 = vsel %vm862_vm6, %v1915_v57, %v1916_v56  ;;  %v512_v57 = vld [vmem:[#allocation4 + $0x1c8] sm:$0xff] }
 0x111   : > { %v921_v33 = vpop.permute.xlu2 %920 }
 0x112   : > { %984 = vmatpush.msrb.mxu1 %v921_v33 }
 0x119   : > { %v2316_v34 = vpop.permute.xlu1 %1898  ;;  %v885_v10 = vpop.permute.xlu2 %884 }
 0x11a   : > { %v1889_v35 = vpop.permute.xlu0 %1888  ;;  %v1901_v42 = vunpack.i.h.bf16 %v2316_v34  ;;  %v1900_v43 = vunpack.i.l.bf16 %v2316_v34 }
 0x11b   : > { %v1891_v36 = vunpack.i.h.bf16 %v1889_v35  ;;  %v1890_v37 = vunpack.i.l.bf16 %v1889_v35  ;;  %v533_v35 = vld [vmem:[#allocation4 + $0x270] sm:$0xff] }
 0x11c   : > { %v899_v53 = vsel %vm898_vm3, %v1900_v43, %v1901_v42  ;;  %v560_v43 = vld [vmem:[#allocation4 + $0x348] sm:$0xff] }
 0x11d   : > { %v923_v38 = vsel %vm922_vm1, %v1890_v37, %v1891_v36  ;;  %v924_v39 = vsel %vm922_vm1, %v1891_v36, %v921_v33  ;;  %v470_v33 = vld [vmem:[#allocation4 + $0x78] sm:$0xff]  ;;  %v467_v36 = vld [vmem:[#allocation4 + $0x60] sm:$0xff] }
 0x11e   : > { %944 = vmatpush.msra.mxu3 %v923_v38  ;;  %964 = vmatpush.msrb.mxu0 %v924_v39  ;;  %v530_v37 = vld [vmem:[#allocation4 + $0x258] sm:$0xff]  ;;  %v464_v38 = vld [vmem:[#allocation4 + $0x48] sm:$0xff]  ;;  %v527_v39 = vld [vmem:[#allocation4 + $0x240] sm:$0xff] }
 0x11f   : > { %1014 = vmatpush.msrb.mxu2 %v470_v33  ;;  %v481_v33 = vld [vmem:[#allocation4 + $0xd0] sm:$0xff] }
 0x121   : > { %v2320_v40 = vpop.permute.xlu1 %1903  ;;  %v849_v29 = vpop.permute.xlu2 %848  ;;  %1015 = vmatpush.msrb.mxu2 %v467_v36  ;;  %v510_v36 = vld [vmem:[#allocation4 + $0x1b8] sm:$0xff] }
 0x122   : > { %v2322_v41 = vpop.permute.xlu0 %1893  ;;  %v1906_v46 = vunpack.i.h.bf16 %v2320_v40  ;;  %v1905_v47 = vunpack.i.l.bf16 %v2320_v40  ;;  %v461_v40 = vld [vmem:[#allocation4 + $0x30] sm:$0xff] }
 0x123   : > { %v1896_v44 = vunpack.i.h.bf16 %v2322_v41  ;;  %v1895_v45 = vunpack.i.l.bf16 %v2322_v41  ;;  %1016 = vmatpush.msrb.mxu2 %v464_v38  ;;  %v472_v38 = vld [vmem:[#allocation4 + $0x88] sm:$0xff] }
 0x124   : > { %v887_v59 = vsel %vm886_vm4, %v1905_v47, %v1906_v46  ;;  %v888_v19 = vsel %vm886_vm4, %v1906_v46, %v885_v10  ;;  %v458_v46 = vld [vmem:[#allocation4 + $0x18] sm:$0xff]  ;;  %v557_v47 = vld [vmem:[#allocation4 + $0x330] sm:$0xff] }
 0x125   : > { %v911_v48 = vsel %vm910_vm2, %v1895_v45, %v1896_v44  ;;  %1017 = vmatpush.msrb.mxu2 %v461_v40  ;;  %v498_v45 = vld [vmem:[#allocation4 + $0x158] sm:$0xff]  ;;  %v656_v40 = vld [vmem:[#allocation6 + $0x2e8] sm:$0xff] }
 0x126   : > { %945 = vmatpush.msra.mxu3 %v911_v48  ;;  %v521_v48 = vld [vmem:[#allocation4 + $0x210] sm:$0xff] }
 0x127   : > { %1018 = vmatpush.msrb.mxu2 %v458_v46  ;;  %v647_v46 = vld [vmem:[#allocation6 + $0x2a0] sm:$0xff] }
 0x128   : > { %946 = vmatpush.msra.mxu3 %v899_v53  ;;  %v551_v53 = vld [vmem:[#allocation4 + $0x300] sm:$0xff] }
 0x129   : > { %v2341_v58 = vpop.permute.xlu1 %1923 }
 0x12a   : > { %v2346_v61 = vpop.permute.xlu0 %1918  ;;  %947 = vmatpush.msra.mxu3 %v887_v59  ;;  %v1926_v2 = vunpack.i.h.bf16 %v2341_v58  ;;  %v1925_v3 = vunpack.i.l.bf16 %v2341_v58  ;;  %v558_v58 = vld [vmem:[#allocation4 + $0x338] sm:$0xff] }
 0x12b   : > { %v1921_v62 = vunpack.i.h.bf16 %v2346_v61  ;;  %v1920_v63 = vunpack.i.l.bf16 %v2346_v61  ;;  %v486_v59 = vld [vmem:[#allocation4 + $0xf8] sm:$0xff]  ;;  %v509_v61 = vld [vmem:[#allocation4 + $0x1b0] sm:$0xff] }
 0x12c   : > { %948 = vmatpush.msra.mxu3 %v875_v0  ;;  %v839_v9 = vsel %vm838_vm8, %v1925_v3, %v1926_v2  ;;  %v506_v0 = vld [vmem:[#allocation4 + $0x198] sm:$0xff]  ;;  %v503_v3 = vld [vmem:[#allocation4 + $0x180] sm:$0xff] }
 0x12d   : > { %v851_v6 = vsel %vm850_vm7, %v1920_v63, %v1921_v62  ;;  %v852_v31 = vsel %vm850_vm7, %v1921_v62, %v849_v29  ;;  %v483_v62 = vld [vmem:[#allocation4 + $0xe0] sm:$0xff] }
 0x12e   : > { %949 = vmatpush.msra.mxu3 %v863_v4  ;;  %v543_v63 = vld [vmem:[#allocation4 + $0x2c0] sm:$0xff]  ;;  %v477_v4 = vld [vmem:[#allocation4 + $0xb0] sm:$0xff] }
 0x130   : > { %950 = vmatpush.msra.mxu3 %v851_v6  ;;  %v502_v6 = vld [vmem:[#allocation4 + $0x178] sm:$0xff] }
 0x131   : > { %v897_v8 = vpop.permute.xlu1 %896 }
 0x132   : > { %v909_v11 = vpop.permute.xlu0 %908  ;;  %951 = vmatpush.msra.mxu3 %v839_v9  ;;  %v900_v16 = vsel %vm898_vm3, %v1901_v42, %v897_v8  ;;  %v501_v42 = vld [vmem:[#allocation4 + $0x170] sm:$0xff]  ;;  %v499_v9 = vld [vmem:[#allocation4 + $0x160] sm:$0xff] }
 0x133   : > { %985 = vmatpush.msrb.mxu1 %v909_v11  ;;  %v912_v13 = vsel %vm910_vm2, %v1896_v44, %v909_v11  ;;  %v524_v44 = vld [vmem:[#allocation4 + $0x228] sm:$0xff]  ;;  %v531_v11 = vld [vmem:[#allocation4 + $0x260] sm:$0xff] }
 0x134   : > { %952 = vmatpush.msra.mxu3 %v2280_v27  ;;  %965 = vmatpush.msrb.mxu0 %v912_v13  ;;  %v536_v27 = vld [vmem:[#allocation4 + $0x288] sm:$0xff] }
 0x135   : > { %1814 = vmatmul.msk.f32.vlgmr.msra.gmra.mxu3 %vm933_vm9, %v2367_v12  ;;  %986 = vmatpush.msrb.mxu1 %v897_v8  ;;  %v534_v8 = vld [vmem:[#allocation4 + $0x278] sm:$0xff]  ;;  %v468_v13 = vld [vmem:[#allocation4 + $0x68] sm:$0xff] }
 0x136   : > { %966 = vmatpush.msrb.mxu0 %v900_v16  ;;  %1024 = vmatpush.msrb.mxu3 %v548_v14  ;;  %v528_v14 = vld [vmem:[#allocation4 + $0x248] sm:$0xff]  ;;  %v462_v16 = vld [vmem:[#allocation4 + $0x38] sm:$0xff] }
 0x137   : > { %987 = vmatpush.msrb.mxu1 %v885_v10  ;;  %v471_v10 = vld [vmem:[#allocation4 + $0x80] sm:$0xff] }
 0x138   : > { %967 = vmatpush.msrb.mxu0 %v888_v19  ;;  %1025 = vmatpush.msrb.mxu3 %v545_v17  ;;  %v493_v17 = vld [vmem:[#allocation4 + $0x130] sm:$0xff]  ;;  %v459_v19 = vld [vmem:[#allocation4 + $0x20] sm:$0xff] }
 0x139   : > { %v861_v23 = vpop.permute.xlu1 %860 }
 0x13a   : > { %v873_v24 = vpop.permute.xlu0 %872  ;;  %1026 = vmatpush.msrb.mxu3 %v542_v20  ;;  %v864_v34 = vsel %vm862_vm6, %v1916_v56, %v861_v23  ;;  %v549_v56 = vld [vmem:[#allocation4 + $0x2f0] sm:$0xff]  ;;  %v555_v20 = vld [vmem:[#allocation4 + $0x320] sm:$0xff] }
 0x13b   : > { %988 = vmatpush.msrb.mxu1 %v873_v24  ;;  %v876_v26 = vsel %vm874_vm5, %v1911_v51, %v873_v24  ;;  %v518_v51 = vld [vmem:[#allocation4 + $0x1f8] sm:$0xff]  ;;  %v552_v24 = vld [vmem:[#allocation4 + $0x308] sm:$0xff] }
 0x13c   : > { %968 = vmatpush.msrb.mxu0 %v876_v26  ;;  %1027 = vmatpush.msrb.mxu3 %v539_v22  ;;  %v522_v22 = vld [vmem:[#allocation4 + $0x218] sm:$0xff]  ;;  %v519_v26 = vld [vmem:[#allocation4 + $0x200] sm:$0xff] }
 0x13d   : > { %989 = vmatpush.msrb.mxu1 %v861_v23  ;;  %v456_v23 = vld [vmem:[#allocation4 + $0x8] sm:$0xff] }
 0x13e   : > { %969 = vmatpush.msrb.mxu0 %v864_v34  ;;  %1028 = vmatpush.msrb.mxu3 %v536_v27  ;;  %v484_v27 = vld [vmem:[#allocation4 + $0xe8] sm:$0xff]  ;;  %v513_v34 = vld [vmem:[#allocation4 + $0x1d0] sm:$0xff] }
 0x13f   : > { %990 = vmatpush.msrb.mxu1 %v849_v29  ;;  %v516_v29 = vld [vmem:[#allocation4 + $0x1e8] sm:$0xff] }
 0x140   : > { %970 = vmatpush.msrb.mxu0 %v852_v31  ;;  %1029 = vmatpush.msrb.mxu3 %v533_v35  ;;  %v478_v35 = vld [vmem:[#allocation4 + $0xb8] sm:$0xff]  ;;  %v475_v31 = vld [vmem:[#allocation4 + $0xa0] sm:$0xff] }
 0x142   : > { %v837_v32 = vpop.permute.xlu0 %836  ;;  %1030 = vmatpush.msrb.mxu3 %v530_v37  ;;  %v507_v37 = vld [vmem:[#allocation4 + $0x1a0] sm:$0xff] }
 0x143   : > { %991 = vmatpush.msrb.mxu1 %v837_v32  ;;  %v840_v41 = vsel %vm838_vm8, %v1926_v2, %v837_v32  ;;  %v540_v2 = vld [vmem:[#allocation4 + $0x2a8] sm:$0xff]  ;;  %v469_v32 = vld [vmem:[#allocation4 + $0x70] sm:$0xff] }
 0x144   : > { %971 = vmatpush.msrb.mxu0 %v840_v41  ;;  %1031 = vmatpush.msrb.mxu3 %v527_v39  ;;  %v504_v39 = vld [vmem:[#allocation4 + $0x188] sm:$0xff]  ;;  %v466_v41 = vld [vmem:[#allocation4 + $0x58] sm:$0xff] }
 0x145   : > { %992 = vmatpush.msrb.mxu1 %v2292_v30  ;;  %v455_v30 = vld [vmem:[#allocation4] sm:$0xff] }
 0x146   : > { %972 = vmatpush.msrb.mxu0 %v2282_v28  ;;  %1816 = vmatmul.msk.f32.vlgmr.msrb.gmra.mxu1 %vm933_vm9, %v2367_v12  ;;  %v492_v28 = vld [vmem:[#allocation4 + $0x128] sm:$0xff] }
 0x147   : > { %1815 = vmatmul.msk.f32.vlgmr.msrb.gmra.mxu0 %vm933_vm9, %v2367_v12  ;;  %1064 = vmatpush.msra.mxu1 %v501_v42  ;;  %v496_v12 = vld [vmem:[#allocation4 + $0x148] sm:$0xff]  ;;  %v653_v42 = vld [vmem:[#allocation6 + $0x2d0] sm:$0xff] }
 0x148   : > { %1056 = vmatpush.msra.mxu0 %v560_v43  ;;  %1032 = vmatpush.msrb.mxu3 %v524_v44  ;;  %v463_v43 = vld [vmem:[#allocation4 + $0x40] sm:$0xff]  ;;  %v650_v44 = vld [vmem:[#allocation6 + $0x2b8] sm:$0xff] }
 0x149   : > { %1065 = vmatpush.msra.mxu1 %v498_v45  ;;  %1019 = vmatpush.msrb.mxu2 %v455_v30  ;;  %v460_v45 = vld [vmem:[#allocation4 + $0x28] sm:$0xff]  ;;  %v638_v30 = vld [vmem:[#allocation6 + $0x258] sm:$0xff] }
 0x14a   : > { %1057 = vmatpush.msra.mxu0 %v557_v47  ;;  %1033 = vmatpush.msrb.mxu3 %v521_v48  ;;  %v457_v47 = vld [vmem:[#allocation4 + $0x10] sm:$0xff]  ;;  %v644_v48 = vld [vmem:[#allocation6 + $0x288] sm:$0xff] }
 0x14b   : > { %1066 = vmatpush.msra.mxu1 %v495_v49  ;;  %1116 = vmatpush.msra.mxu2 %v561_v52  ;;  %v641_v49 = vld [vmem:[#allocation6 + $0x270] sm:$0xff]  ;;  %v632_v52 = vld [vmem:[#allocation6 + $0x228] sm:$0xff] }
 0x14c   : > { %1058 = vmatpush.msra.mxu0 %v554_v50  ;;  %1034 = vmatpush.msrb.mxu3 %v518_v51  ;;  %v931_v50 = vpop.permute.xlu1 %930  ;;  %v635_v51 = vld [vmem:[#allocation6 + $0x240] sm:$0xff] }
 0x14d   : > { %1067 = vmatpush.msra.mxu1 %v492_v28  ;;  %1117 = vmatpush.msra.mxu2 %v558_v58  ;;  %v626_v58 = vld [vmem:[#allocation6 + $0x1f8] sm:$0xff] }
 0x14e   : > { %1059 = vmatpush.msra.mxu0 %v551_v53  ;;  %1035 = vmatpush.msrb.mxu3 %v515_v54  ;;  %v629_v54 = vld [vmem:[#allocation6 + $0x210] sm:$0xff] }
 0x14f   : > { %1068 = vmatpush.msra.mxu1 %v489_v55  ;;  %1118 = vmatpush.msra.mxu2 %v555_v20  ;;  %v677_v20 = vld [vmem:[#allocation6 + $0x390] sm:$0xff] }
 0x150   : > { %1084 = vmatpush.msrb.mxu0 %v549_v56  ;;  %1036 = vmatpush.msrb.mxu3 %v512_v57  ;;  %v550_v56 = vld [vmem:[#allocation4 + $0x2f8] sm:$0xff]  ;;  %v547_v57 = vld [vmem:[#allocation4 + $0x2e0] sm:$0xff] }
 0x151   : > { %1069 = vmatpush.msra.mxu1 %v486_v59  ;;  %1119 = vmatpush.msra.mxu2 %v552_v24  ;;  %v544_v59 = vld [vmem:[#allocation4 + $0x2c8] sm:$0xff] }
 0x152   : > { %1085 = vmatpush.msrb.mxu0 %v546_v60  ;;  %1037 = vmatpush.msrb.mxu3 %v509_v61  ;;  %v623_v60 = vld [vmem:[#allocation6 + $0x1e0] sm:$0xff]  ;;  %v541_v61 = vld [vmem:[#allocation4 + $0x2b0] sm:$0xff]  ;;  %v520_v24 = vld [vmem:[#allocation4 + $0x208] sm:$0xff] }
 0x153   : > { %1070 = vmatpush.msra.mxu1 %v483_v62  ;;  %v620_v62 = vld [vmem:[#allocation6 + $0x1c8] sm:$0xff] }
 0x154   : > { %1086 = vmatpush.msrb.mxu0 %v543_v63  ;;  %1038 = vmatpush.msrb.mxu3 %v506_v0  ;;  %v538_v0 = vld [vmem:[#allocation4 + $0x298] sm:$0xff] }
 0x155   : > { %1071 = vmatpush.msra.mxu1 %v480_v1  ;;  %v617_v1 = vld [vmem:[#allocation6 + $0x1b0] sm:$0xff] }
 0x156   : > { %1087 = vmatpush.msrb.mxu0 %v540_v2  ;;  %1039 = vmatpush.msrb.mxu3 %v503_v3 }
 0x157   : > { %1072 = vmatpush.msra.mxu1 %v477_v4 }
 0x158   : > { %1088 = vmatpush.msrb.mxu0 %v537_v5  ;;  %1124 = vmatpush.msra.mxu3 %v502_v6  ;;  %v535_v5 = vld [vmem:[#allocation4 + $0x280] sm:$0xff]  ;;  %v614_v6 = vld [vmem:[#allocation6 + $0x198] sm:$0xff] }
 0x159   : > { %1073 = vmatpush.msra.mxu1 %v474_v7 }
 0x15a   : > { %1089 = vmatpush.msrb.mxu0 %v534_v8  ;;  %1125 = vmatpush.msra.mxu3 %v499_v9  ;;  %v608_v8 = vld [vmem:[#allocation6 + $0x168] sm:$0xff] }
 0x15b   : > { %1074 = vmatpush.msra.mxu1 %v471_v10  ;;  %v532_v10 = vld [vmem:[#allocation4 + $0x268] sm:$0xff] }
 0x15c   : > { %1090 = vmatpush.msrb.mxu0 %v531_v11  ;;  %1126 = vmatpush.msra.mxu3 %v496_v12  ;;  %v605_v11 = vld [vmem:[#allocation6 + $0x150] sm:$0xff]  ;;  %v683_v12 = vld [vmem:[#allocation6 + $0x3c0] sm:$0xf] }
 0x15d   : > { %1075 = vmatpush.msra.mxu1 %v468_v13  ;;  %v529_v13 = vld [vmem:[#allocation4 + $0x250] sm:$0xff] }
 0x15e   : > { %1091 = vmatpush.msrb.mxu0 %v528_v14  ;;  %1127 = vmatpush.msra.mxu3 %v493_v17  ;;  %v611_v14 = vld [vmem:[#allocation6 + $0x180] sm:$0xff]  ;;  %v526_v17 = vld [vmem:[#allocation4 + $0x238] sm:$0xff] }
 0x15f   : > { %1076 = vmatpush.msra.mxu1 %v465_v15  ;;  %v602_v15 = vld [vmem:[#allocation6 + $0x138] sm:$0xff] }
 0x160   : > { %1092 = vmatpush.msrb.mxu0 %v525_v18  ;;  %1128 = vmatpush.msra.mxu3 %v490_v21  ;;  %v2411_v18 = vld.sshfl [vmem:[#allocation1 + $0x8] sm:$0xff pattern:$0x75316420]  ;;  %v523_v21 = vld [vmem:[#allocation4 + $0x220] sm:$0xff] }
 0x161   : > { %1077 = vmatpush.msra.mxu1 %v462_v16  ;;  %v680_v16 = vld [vmem:[#allocation6 + $0x3a8] sm:$0xff] }
 0x162   : > { %1093 = vmatpush.msrb.mxu0 %v522_v22  ;;  %1129 = vmatpush.msra.mxu3 %v487_v25  ;;  %v596_v22 = vld [vmem:[#allocation6 + $0x108] sm:$0xff]  ;;  %v593_v25 = vld [vmem:[#allocation6 + $0xf0] sm:$0xff] }
 0x163   : > { %1078 = vmatpush.msra.mxu1 %v459_v19  ;;  %v599_v19 = vld [vmem:[#allocation6 + $0x120] sm:$0xff] }
 0x164   : > { %1094 = vmatpush.msrb.mxu0 %v519_v26  ;;  %1130 = vmatpush.msra.mxu3 %v484_v27  ;;  %v671_v26 = vld [vmem:[#allocation6 + $0x360] sm:$0xff]  ;;  %v517_v27 = vld [vmem:[#allocation4 + $0x1f0] sm:$0xff] }
 0x165   : > { %1079 = vmatpush.msra.mxu1 %v456_v23  ;;  %v674_v23 = vld [vmem:[#allocation6 + $0x378] sm:$0xff] }
 0x166   : > { %1095 = vmatpush.msrb.mxu0 %v516_v29  ;;  %1131 = vmatpush.msra.mxu3 %v481_v33  ;;  %v590_v29 = vld [vmem:[#allocation6 + $0xd8] sm:$0xff]  ;;  %v668_v33 = vld [vmem:[#allocation6 + $0x348] sm:$0xff] }
 0x167   : > { %1232 = vmatpush.msrb.mxu1 %v656_v40  ;;  %v659_v40 = vld [vmem:[#allocation6 + $0x300] sm:$0xff] }
 0x168   : > { %1096 = vmatpush.msrb.mxu0 %v513_v34  ;;  %1132 = vmatpush.msra.mxu3 %v478_v35  ;;  %v514_v34 = vld [vmem:[#allocation4 + $0x1d8] sm:$0xff]  ;;  %v587_v35 = vld [vmem:[#allocation6 + $0xc0] sm:$0xff] }
 0x169   : > { %1233 = vmatpush.msrb.mxu1 %v653_v42  ;;  %v2416_v42 = vld.sshfl [vmem:[#allocation1 + $0x10] sm:$0xff pattern:$0x75316420] }
 0x16a   : > { %1097 = vmatpush.msrb.mxu0 %v510_v36  ;;  %1133 = vmatpush.msra.mxu3 %v475_v31  ;;  %v665_v36 = vld [vmem:[#allocation6 + $0x330] sm:$0xff]  ;;  %v511_v31 = vld [vmem:[#allocation4 + $0x1c0] sm:$0xff] }
 0x16b   : > { %1234 = vmatpush.msrb.mxu1 %v650_v44  ;;  %v562_v44 = vld [vmem:[#allocation4 + $0x358] sm:$0xff] }
 0x16c   : > { %1098 = vmatpush.msrb.mxu0 %v507_v37  ;;  %1134 = vmatpush.msra.mxu3 %v472_v38  ;;  %v584_v37 = vld [vmem:[#allocation6 + $0xa8] sm:$0xff]  ;;  %v662_v38 = vld [vmem:[#allocation6 + $0x318] sm:$0xff] }
 0x16d   : > { %1235 = vmatpush.msrb.mxu1 %v647_v46  ;;  %v575_v46 = vld [vmem:[#allocation6 + $0x60] sm:$0xff] }
 0x16e   : > { %1099 = vmatpush.msrb.mxu0 %v504_v39  ;;  %1135 = vmatpush.msra.mxu3 %v469_v32  ;;  %v508_v39 = vld [vmem:[#allocation4 + $0x1a8] sm:$0xff]  ;;  %v581_v32 = vld [vmem:[#allocation6 + $0x90] sm:$0xff] }
 0x16f   : > { %1236 = vmatpush.msrb.mxu1 %v644_v48  ;;  %v654_v48 = vld [vmem:[#allocation6 + $0x2d8] sm:$0xff] }
 0x170   : > { %1136 = vmatpush.msra.mxu3 %v466_v41  ;;  %v505_v41 = vld [vmem:[#allocation4 + $0x190] sm:$0xff] }
 0x171   : > { %1237 = vmatpush.msrb.mxu1 %v641_v49  ;;  %v572_v49 = vld [vmem:[#allocation6 + $0x48] sm:$0xff] }
 0x172   : > { %1137 = vmatpush.msra.mxu3 %v463_v43  ;;  %v578_v43 = vld [vmem:[#allocation6 + $0x78] sm:$0xff] }
 0x173   : > { %1238 = vmatpush.msrb.mxu1 %v638_v30  ;;  %v556_v30 = vld [vmem:[#allocation4 + $0x328] sm:$0xff] }
 0x174   : > { %1138 = vmatpush.msra.mxu3 %v460_v45  ;;  %v657_v45 = vld [vmem:[#allocation6 + $0x2f0] sm:$0xff] }
 0x175   : > { %1239 = vmatpush.msrb.mxu1 %v635_v51  ;;  %v569_v51 = vld [vmem:[#allocation6 + $0x30] sm:$0xff] }
 0x176   : > { %1139 = vmatpush.msra.mxu3 %v457_v47  ;;  %v559_v47 = vld [vmem:[#allocation4 + $0x340] sm:$0xff] }
 0x177   : > { %1240 = vmatpush.msrb.mxu1 %v632_v52  ;;  %v648_v52 = vld [vmem:[#allocation6 + $0x2a8] sm:$0xff] }
 0x179   : > { %1241 = vmatpush.msrb.mxu1 %v629_v54  ;;  %v566_v54 = vld [vmem:[#allocation6 + $0x18] sm:$0xff] }
 0x17b   : > { %1242 = vmatpush.msrb.mxu1 %v626_v58  ;;  %v2421_v58 = vld.sshfl [vmem:[#allocation1] sm:$0xff pattern:$0x75316420] }
 0x17d   : > { %1243 = vmatpush.msrb.mxu1 %v623_v60  ;;  %v603_v60 = vld [vmem:[#allocation6 + $0x140] sm:$0xff] }
 0x17f   : > { %1244 = vmatpush.msrb.mxu1 %v620_v62  ;;  %v639_v62 = vld [vmem:[#allocation6 + $0x260] sm:$0xff] }
 0x181   : > { %1245 = vmatpush.msrb.mxu1 %v617_v1  ;;  %v636_v1 = vld [vmem:[#allocation6 + $0x248] sm:$0xff] }
 0x183   : > { %1246 = vmatpush.msrb.mxu1 %v614_v6  ;;  %v607_v6 = vld [vmem:[#allocation6 + $0x160] sm:$0xff] }
 0x185   : > { %1247 = vmatpush.msrb.mxu1 %v611_v14  ;;  %v601_v14 = vld [vmem:[#allocation6 + $0x130] sm:$0xff] }
 0x1b8   : > { %v954_v28 = vpop.f32.mrf.mxu3 }
 0x1b9   : > { %v955_v53 = vadd.f32 %v954_v28, %v931_v50  ;;  %v553_v28 = vld [vmem:[#allocation4 + $0x310] sm:$0xff] }
 0x1bb   : > { %v2397_v55 = vmax.f32 %v955_v53, 0.0  ;;  %v609_v53 = vld [vmem:[#allocation6 + $0x170] sm:$0xff] }
 0x1bd   : > { %1020 = vmatmul.f32.vlgmr.msrb.gmra.mxu2 %v2397_v55  ;;  %1080 = vmatmul.f32.vlgmr.msra.gmra.mxu1 %v2397_v55 }
 0x1be   : > { %1144 = vmatpush.msrb.mxu2 %v550_v56  ;;  %v606_v56 = vld [vmem:[#allocation6 + $0x158] sm:$0xff] }
 0x1c0   : > { %1145 = vmatpush.msrb.mxu2 %v547_v57  ;;  %v563_v57 = vld [vmem:[#allocation6] sm:$0xff] }
 0x1c2   : > { %1146 = vmatpush.msrb.mxu2 %v544_v59  ;;  %v642_v59 = vld [vmem:[#allocation6 + $0x278] sm:$0xff] }
 0x1c3   : > { %v994_v63 = vpop.f32.mrf.mxu1 }
 0x1c4   : > { %v995_v2 = vadd.f32 %v994_v63, %v931_v50  ;;  %1147 = vmatpush.msrb.mxu2 %v541_v61  ;;  %v974_v3 = vpop.f32.mrf.mxu0  ;;  %v684_v61 = vld [vmem:[#allocation6 + $0x3c8] sm:$0xf] }
 0x1c5   : > { %v975_v4 = vadd.f32 %v974_v3, %v931_v50  ;;  %1248 = vmatmul.f32.vlgmr.msrb.gmra.mxu1 %v2411_v18  ;;  %v651_v50 = vld [vmem:[#allocation6 + $0x2c0] sm:$0xff]  ;;  %v600_v63 = vld [vmem:[#allocation6 + $0x128] sm:$0xff]  ;;  %v597_v3 = vld [vmem:[#allocation6 + $0x110] sm:$0xff] }
 0x1c6   : > { %v2401_v7 = vmax.f32 %v995_v2, 0.0  ;;  %1148 = vmatpush.msrb.mxu2 %v538_v0  ;;  %v681_v0 = vld [vmem:[#allocation6 + $0x3b0] sm:$0xff]  ;;  %v610_v2 = vld [vmem:[#allocation6 + $0x178] sm:$0xff] }
 0x1c7   : > { %v2403_v9 = vmax.f32 %v975_v4, 0.0  ;;  %v678_v4 = vld [vmem:[#allocation6 + $0x398] sm:$0xff]  ;;  %1332 = vmatpush.msra.mxu1 %v610_v2  ;;  %v631_v2 = vld [vmem:[#allocation6 + $0x220] sm:$0xff] }
 0x1c8   : > { %1149 = vmatpush.msrb.mxu2 %v535_v5  ;;  %1817 = vmatmul.msk.f32.vlgmr.msra.gmra.mxu0 %vm1000_vm10, %v2401_v7  ;;  %v633_v5 = vld [vmem:[#allocation6 + $0x230] sm:$0xff] }
 0x1c9   : > { %1818 = vmatmul.msk.f32.vlgmr.msra.gmra.mxu2 %vm1000_vm10, %v2401_v7  ;;  %1212 = vmatpush.msra.mxu0 %v608_v8  ;;  %v675_v8 = vld [vmem:[#allocation6 + $0x380] sm:$0xff] }
 0x1ca   : > { %1040 = vmatmul.f32.vlgmr.msrb.gmra.mxu3 %v2403_v9  ;;  %1150 = vmatpush.msrb.mxu2 %v532_v10  ;;  %v604_v10 = vld [vmem:[#allocation6 + $0x148] sm:$0xff] }
 0x1cb   : > { %1213 = vmatpush.msra.mxu0 %v605_v11  ;;  %1820 = vmatpush.msk.msrb.mxu3 %vm1202_vm11, %v683_v12  ;;  %v591_v11 = vld [vmem:[#allocation6 + $0xe0] sm:$0xff]  ;;  %v672_v12 = vld [vmem:[#allocation6 + $0x368] sm:$0xff] }
 0x1cc   : > { %1151 = vmatpush.msrb.mxu2 %v529_v13  ;;  %1333 = vmatpush.msra.mxu1 %v607_v6  ;;  %v627_v13 = vld [vmem:[#allocation6 + $0x200] sm:$0xff]  ;;  %v616_v6 = vld [vmem:[#allocation6 + $0x1a8] sm:$0xff] }
 0x1cd   : > { %1214 = vmatpush.msra.mxu0 %v602_v15  ;;  %1260 = vmatpush.msrb.mxu3 %v680_v16  ;;  %v588_v15 = vld [vmem:[#allocation6 + $0xc8] sm:$0xff]  ;;  %v669_v16 = vld [vmem:[#allocation6 + $0x350] sm:$0xff] }
 0x1ce   : > { %1152 = vmatpush.msrb.mxu2 %v526_v17  ;;  %1334 = vmatpush.msra.mxu1 %v604_v10  ;;  %v624_v17 = vld [vmem:[#allocation6 + $0x1e8] sm:$0xff] }
 0x1cf   : > { %1215 = vmatpush.msra.mxu0 %v599_v19  ;;  %1261 = vmatpush.msrb.mxu3 %v677_v20  ;;  %v598_v19 = vld [vmem:[#allocation6 + $0x118] sm:$0xff]  ;;  %v585_v20 = vld [vmem:[#allocation6 + $0xb0] sm:$0xff] }
 0x1d0   : > { %1153 = vmatpush.msrb.mxu2 %v523_v21  ;;  %1100 = vmatmul.f32.vlgmr.msrb.gmra.mxu0 %v2403_v9  ;;  %v666_v21 = vld [vmem:[#allocation6 + $0x338] sm:$0xff] }
 0x1d1   : > { %1216 = vmatpush.msra.mxu0 %v596_v22  ;;  %1262 = vmatpush.msrb.mxu3 %v674_v23  ;;  %v621_v22 = vld [vmem:[#allocation6 + $0x1d0] sm:$0xff]  ;;  %v595_v23 = vld [vmem:[#allocation6 + $0x100] sm:$0xff] }
 0x1d2   : > { %1140 = vmatmul.f32.vlgmr.msra.gmra.mxu3 %v2397_v55  ;;  %1154 = vmatpush.msrb.mxu2 %v520_v24  ;;  %v645_v55 = vld [vmem:[#allocation6 + $0x290] sm:$0xff]  ;;  %v582_v24 = vld [vmem:[#allocation6 + $0x98] sm:$0xff] }
 0x1d3   : > { %1217 = vmatpush.msra.mxu0 %v593_v25  ;;  %1263 = vmatpush.msrb.mxu3 %v671_v26  ;;  %v663_v25 = vld [vmem:[#allocation6 + $0x320] sm:$0xff]  ;;  %v618_v26 = vld [vmem:[#allocation6 + $0x1b8] sm:$0xff] }
 0x1d4   : > { %1155 = vmatpush.msrb.mxu2 %v517_v27  ;;  %1335 = vmatpush.msra.mxu1 %v601_v14  ;;  %v592_v27 = vld [vmem:[#allocation6 + $0xe8] sm:$0xff] }
 0x1d5   : > { %1218 = vmatpush.msra.mxu0 %v590_v29  ;;  %1264 = vmatpush.msrb.mxu3 %v668_v33  ;;  %v579_v29 = vld [vmem:[#allocation6 + $0x80] sm:$0xff]  ;;  %v660_v33 = vld [vmem:[#allocation6 + $0x308] sm:$0xff] }
 0x1d6   : > { %1156 = vmatpush.msrb.mxu2 %v514_v34  ;;  %1336 = vmatpush.msra.mxu1 %v598_v19  ;;  %v615_v34 = vld [vmem:[#allocation6 + $0x1a0] sm:$0xff] }
 0x1d7   : > { %1219 = vmatpush.msra.mxu0 %v587_v35  ;;  %1265 = vmatpush.msrb.mxu3 %v665_v36  ;;  %v589_v35 = vld [vmem:[#allocation6 + $0xd0] sm:$0xff]  ;;  %v576_v36 = vld [vmem:[#allocation6 + $0x68] sm:$0xff] }
 0x1d8   : > { %1157 = vmatpush.msrb.mxu2 %v511_v31  ;;  %1337 = vmatpush.msra.mxu1 %v595_v23  ;;  %v612_v31 = vld [vmem:[#allocation6 + $0x188] sm:$0xff] }
 0x1d9   : > { %1220 = vmatpush.msra.mxu0 %v584_v37  ;;  %1266 = vmatpush.msrb.mxu3 %v662_v38  ;;  %v586_v37 = vld [vmem:[#allocation6 + $0xb8] sm:$0xff]  ;;  %v573_v38 = vld [vmem:[#allocation6 + $0x50] sm:$0xff] }
 0x1da   : > { %1158 = vmatpush.msrb.mxu2 %v508_v39  ;;  %1338 = vmatpush.msra.mxu1 %v592_v27  ;;  %v685_v39 = vld [vmem:[#allocation6 + $0x3d0] sm:$0xf] }
 0x1db   : > { %1221 = vmatpush.msra.mxu0 %v581_v32  ;;  %1267 = vmatpush.msrb.mxu3 %v659_v40  ;;  %v583_v32 = vld [vmem:[#allocation6 + $0xa0] sm:$0xff]  ;;  %v570_v40 = vld [vmem:[#allocation6 + $0x38] sm:$0xff] }
 0x1dc   : > { %1159 = vmatpush.msrb.mxu2 %v505_v41  ;;  %1821 = vmatmul.msk.f32.vlgmr.msrb.gmra.mxu3 %vm1199_vm12, %v2416_v42  ;;  %v682_v41 = vld [vmem:[#allocation6 + $0x3b8] sm:$0xff] }
 0x1dd   : > { %1160 = vmatmul.f32.vlgmr.msrb.gmra.mxu2 %v2403_v9  ;;  %1222 = vmatpush.msra.mxu0 %v578_v43  ;;  %v630_v9 = vld [vmem:[#allocation6 + $0x218] sm:$0xff]  ;;  %v580_v43 = vld [vmem:[#allocation6 + $0x88] sm:$0xff] }
 0x1de   : > { %1176 = vmatpush.msra.mxu2 %v562_v44  ;;  %1292 = vmatpush.msra.mxu3 %v657_v45  ;;  %v567_v44 = vld [vmem:[#allocation6 + $0x20] sm:$0xff] }
 0x1df   : > { %1223 = vmatpush.msra.mxu0 %v575_v46  ;;  %1339 = vmatpush.msra.mxu1 %v589_v35  ;;  %v679_v45 = vld [vmem:[#allocation6 + $0x3a0] sm:$0xff]  ;;  %v577_v46 = vld [vmem:[#allocation6 + $0x70] sm:$0xff] }
 0x1e0   : > { %1177 = vmatpush.msra.mxu2 %v559_v47  ;;  %1293 = vmatpush.msra.mxu3 %v654_v48  ;;  %v564_v47 = vld [vmem:[#allocation6 + $0x8] sm:$0xff] }
 0x1e1   : > { %1224 = vmatpush.msra.mxu0 %v572_v49  ;;  %1340 = vmatpush.msra.mxu1 %v586_v37  ;;  %v676_v48 = vld [vmem:[#allocation6 + $0x388] sm:$0xff]  ;;  %v574_v49 = vld [vmem:[#allocation6 + $0x58] sm:$0xff] }
 0x1e2   : > { %1178 = vmatpush.msra.mxu2 %v556_v30  ;;  %1294 = vmatpush.msra.mxu3 %v651_v50  ;;  %v658_v30 = vld [vmem:[#allocation6 + $0x2f8] sm:$0xff]  ;;  %v673_v50 = vld [vmem:[#allocation6 + $0x370] sm:$0xff] }
 0x1e3   : > { %1225 = vmatpush.msra.mxu0 %v569_v51  ;;  %1341 = vmatpush.msra.mxu1 %v583_v32  ;;  %v655_v51 = vld [vmem:[#allocation6 + $0x2e0] sm:$0xff] }
 0x1e4   : > { %1179 = vmatpush.msra.mxu2 %v553_v28  ;;  %1295 = vmatpush.msra.mxu3 %v648_v52  ;;  %v571_v28 = vld [vmem:[#allocation6 + $0x40] sm:$0xff]  ;;  %v670_v52 = vld [vmem:[#allocation6 + $0x358] sm:$0xff] }
 0x1e5   : > { %1226 = vmatpush.msra.mxu0 %v566_v54  ;;  %1819 = vmatmul.msk.f32.vlgmr.msra.gmra.mxu2 %vm1000_vm10, %v2401_v7  ;;  %v594_v7 = vld [vmem:[#allocation6 + $0xf8] sm:$0xff]  ;;  %v652_v54 = vld [vmem:[#allocation6 + $0x2c8] sm:$0xff] }
 0x1e6   : > { %1272 = vmatpush.msrb.mxu2 %v609_v53  ;;  %1296 = vmatpush.msra.mxu3 %v645_v55  ;;  %v568_v53 = vld [vmem:[#allocation6 + $0x28] sm:$0xff]  ;;  %v667_v55 = vld [vmem:[#allocation6 + $0x340] sm:$0xff] }
 0x1e7   : > { %1227 = vmatpush.msra.mxu0 %v563_v57  ;;  %1342 = vmatpush.msra.mxu1 %v580_v43  ;;  %v649_v57 = vld [vmem:[#allocation6 + $0x2b0] sm:$0xff] }
 0x1e8   : > { %1273 = vmatpush.msrb.mxu2 %v606_v56  ;;  %1228 = vmatmul.f32.vlgmr.msra.gmra.mxu0 %v2421_v58  ;;  %v565_v56 = vld [vmem:[#allocation6 + $0x10] sm:$0xff] }
 0x1e9   : > { %1297 = vmatpush.msra.mxu3 %v642_v59  ;;  %1822 = vmatpush.msk.msrb.mxu0 %vm1202_vm11, %v684_v61  ;;  %v664_v59 = vld [vmem:[#allocation6 + $0x328] sm:$0xff]  ;;  %v661_v61 = vld [vmem:[#allocation6 + $0x310] sm:$0xff] }
 0x1ea   : > { %1274 = vmatpush.msrb.mxu2 %v603_v60  ;;  %1343 = vmatpush.msra.mxu1 %v577_v46  ;;  %v646_v60 = vld [vmem:[#allocation6 + $0x298] sm:$0xff] }
 0x1eb   : > { %1298 = vmatpush.msra.mxu3 %v639_v62  ;;  %1320 = vmatpush.msrb.mxu0 %v681_v0  ;;  %v643_v62 = vld [vmem:[#allocation6 + $0x280] sm:$0xff]  ;;  %v637_v0 = vld [vmem:[#allocation6 + $0x250] sm:$0xff] }
 0x1ec   : > { %1275 = vmatpush.msrb.mxu2 %v600_v63  ;;  %1344 = vmatpush.msra.mxu1 %v574_v49  ;;  %v640_v63 = vld [vmem:[#allocation6 + $0x268] sm:$0xff] }
 0x1ed   : > { %1299 = vmatpush.msra.mxu3 %v636_v1  ;;  %1321 = vmatpush.msrb.mxu0 %v678_v4  ;;  %v634_v1 = vld [vmem:[#allocation6 + $0x238] sm:$0xff]  ;;  %v625_v4 = vld [vmem:[#allocation6 + $0x1f0] sm:$0xff] }
 0x1ee   : > { %1276 = vmatpush.msrb.mxu2 %v597_v3  ;;  %1345 = vmatpush.msra.mxu1 %v571_v28  ;;  %v628_v3 = vld [vmem:[#allocation6 + $0x208] sm:$0xff] }
 0x1ef   : > { %1300 = vmatpush.msra.mxu3 %v633_v5  ;;  %1322 = vmatpush.msrb.mxu0 %v675_v8  ;;  %v622_v5 = vld [vmem:[#allocation6 + $0x1d8] sm:$0xff] }
 0x1f0   : > { %1277 = vmatpush.msrb.mxu2 %v594_v7  ;;  %1346 = vmatpush.msra.mxu1 %v568_v53  ;;  %v613_v7 = vld [vmem:[#allocation6 + $0x190] sm:$0xff] }
 0x1f1   : > { %1301 = vmatpush.msra.mxu3 %v630_v9  ;;  %1323 = vmatpush.msrb.mxu0 %v672_v12 }
 0x1f2   : > { %1278 = vmatpush.msrb.mxu2 %v591_v11  ;;  %1347 = vmatpush.msra.mxu1 %v565_v56 }
 0x1f3   : > { %1302 = vmatpush.msra.mxu3 %v627_v13  ;;  %1324 = vmatpush.msrb.mxu0 %v669_v16 }
 0x1f4   : > { %1279 = vmatpush.msrb.mxu2 %v588_v15  ;;  %1348 = vmatmul.f32.vlgmr.msra.gmra.mxu1 %v2421_v58 }
 0x1f5   : > { %1303 = vmatpush.msra.mxu3 %v624_v17  ;;  %1325 = vmatpush.msrb.mxu0 %v666_v21 }
 0x1f6   : > { %1280 = vmatpush.msrb.mxu2 %v585_v20 }
 0x1f7   : > { %1304 = vmatpush.msra.mxu3 %v621_v22  ;;  %1326 = vmatpush.msrb.mxu0 %v663_v25 }
 0x1f8   : > { %1281 = vmatpush.msrb.mxu2 %v582_v24 }
 0x1f9   : > { %1305 = vmatpush.msra.mxu3 %v618_v26  ;;  %1327 = vmatpush.msrb.mxu0 %v660_v33 }
 0x1fa   : > { %1282 = vmatpush.msrb.mxu2 %v579_v29  ;;  %1823 = vmatmul.msk.f32.vlgmr.msrb.gmra.mxu0 %vm1199_vm12, %v2416_v42 }
 0x1fb   : > { %1306 = vmatpush.msra.mxu3 %v615_v34  ;;  %1824 = vmatpush.msk.msra.mxu0 %vm1202_vm11, %v685_v39 }
 0x1fc   : > { %1283 = vmatpush.msrb.mxu2 %v576_v36 }
 0x1fd   : > { %1307 = vmatpush.msra.mxu3 %v612_v31  ;;  %1380 = vmatpush.msra.mxu0 %v682_v41 }
 0x1fe   : > { %1284 = vmatpush.msrb.mxu2 %v573_v38  ;;  %1308 = vmatmul.f32.vlgmr.msra.gmra.mxu3 %v2411_v18 }
 0x1ff   : > { %1381 = vmatpush.msra.mxu0 %v679_v45 }
 0x200   : > { %1285 = vmatpush.msrb.mxu2 %v570_v40 }
 0x201   : > { %1382 = vmatpush.msra.mxu0 %v676_v48 }
 0x202   : > { %1286 = vmatpush.msrb.mxu2 %v567_v44 }
 0x203   : > { %1383 = vmatpush.msra.mxu0 %v673_v50 }
 0x204   : > { %1287 = vmatpush.msrb.mxu2 %v564_v47 }
 0x205   : > { %1288 = vmatmul.f32.vlgmr.msrb.gmra.mxu2 %v2421_v58  ;;  %1384 = vmatpush.msra.mxu0 %v670_v52  ;;  %v619_v58 = vld [vmem:[#allocation6 + $0x1c0] sm:$0xff] }
 0x206   : > { %1352 = vmatpush.msra.mxu2 %v658_v30 }
 0x207   : > { %1385 = vmatpush.msra.mxu0 %v667_v55 }
 0x208   : > { %1353 = vmatpush.msra.mxu2 %v655_v51 }
 0x209   : > { %1386 = vmatpush.msra.mxu0 %v664_v59 }
 0x20a   : > { %1354 = vmatpush.msra.mxu2 %v652_v54 }
 0x20b   : > { %1387 = vmatpush.msra.mxu0 %v661_v61 }
 0x20c   : > { %1355 = vmatpush.msra.mxu2 %v649_v57  ;;  %1825 = vmatmul.msk.f32.vlgmr.msra.gmra.mxu0 %vm1199_vm12, %v2416_v42 }
 0x20e   : > { %1356 = vmatpush.msra.mxu2 %v646_v60 }
 0x210   : > { %1357 = vmatpush.msra.mxu2 %v643_v62 }
 0x212   : > { %1358 = vmatpush.msra.mxu2 %v640_v63 }
 0x214   : > { %1359 = vmatpush.msra.mxu2 %v637_v0 }
 0x216   : > { %1360 = vmatpush.msra.mxu2 %v634_v1 }
 0x218   : > { %1361 = vmatpush.msra.mxu2 %v631_v2 }
 0x21a   : > { %1362 = vmatpush.msra.mxu2 %v628_v3 }
 0x21c   : > { %1363 = vmatpush.msra.mxu2 %v625_v4 }
 0x21e   : > { %1364 = vmatpush.msra.mxu2 %v622_v5 }
 0x220   : > { %1365 = vmatpush.msra.mxu2 %v619_v58 }
 0x222   : > { %1366 = vmatpush.msra.mxu2 %v616_v6 }
 0x224   : > { %1367 = vmatpush.msra.mxu2 %v613_v7 }
 0x225   : > { %1368 = vmatmul.f32.vlgmr.msra.gmra.mxu2 %v2411_v18 }
 0x23a   : > { %v1081_v9 = vpop.f32.mrf.mxu1 }
 0x240   : > { %v1021_v8 = vpop.f32.mrf.mxu2 }
 0x242   : > { %v1249_v20 = vpop.f32.mrf.mxu1 }
 0x245   : > { %v1061_v42 = vpop.f32.mrf.mxu0 }
 0x24c   : > { %v1121_v14 = vpop.f32.mrf.mxu2 }
 0x24d   : > { %v1041_v10 = vpop.f32.mrf.mxu3  ;;  %v1101_v11 = vpop.f32.mrf.mxu0 }
 0x24e   : > { %v1042_v12 = vadd.f32 %v1041_v10, %v1021_v8  ;;  %v1102_v13 = vadd.f32 %v1101_v11, %v1081_v9 }
 0x250   : > { %v1062_v15 = vadd.f32 %v1061_v42, %v1042_v12  ;;  %v1122_v16 = vadd.f32 %v1121_v14, %v1102_v13  ;;  %v430_v14 = vld [vmem:[%s2565_s5] sm:$0xf] }
 0x252   : > { %1184 = vst [vmem:[#allocation3 + $0x10] sm:$0xf] %v1062_v15  ;;  %v2519_v15 = vld [vmem:[%s2564_s4] sm:$0xf] }
 0x253   : > { %1185 = vst [vmem:[#allocation3] sm:$0xf] %v1122_v16  ;;  %v716_v16 = vld [vmem:[#allocation8 + $0xf0] sm:$0xff] }
 0x255   : > { %v1141_v17 = vpop.f32.mrf.mxu3 }
 0x25f   : > { %v1269_v22 = vpop.f32.mrf.mxu3 }
 0x260   : > { %v1161_v19 = vpop.f32.mrf.mxu2 }
 0x261   : > { %v1162_v24 = vadd.f32 %v1161_v19, %v1141_v17  ;;  %v714_v17 = vld [vmem:[#allocation8 + $0xe0] sm:$0xff]  ;;  %v748_v19 = vld [vmem:[#allocation8 + $0x1f0] sm:$0xff] }
 0x262   : > { %1592 = vmatpush.msrb.mxu2 %v748_v19  ;;  %v735_v19 = vld [vmem:[#allocation8 + $0x188] sm:$0xff] }
 0x265   : > { %v1229_v21 = vpop.f32.mrf.mxu0 }
 0x266   : > { %v1250_v23 = vadd.f32 %v1249_v20, %v1229_v21  ;;  %v712_v20 = vld [vmem:[#allocation8 + $0xd0] sm:$0xff]  ;;  %v746_v21 = vld [vmem:[#allocation8 + $0x1e0] sm:$0xff] }
 0x267   : > { %1593 = vmatpush.msrb.mxu2 %v746_v21  ;;  %v689_v21 = vld [vmem:[#allocation8 + $0x18] sm:$0xff] }
 0x268   : > { %v1270_v18 = vadd.f32 %v1269_v22, %v1250_v23  ;;  %v1181_v25 = vpop.f32.mrf.mxu2  ;;  %v710_v22 = vld [vmem:[#allocation8 + $0xc0] sm:$0xff]  ;;  %v744_v23 = vld [vmem:[#allocation8 + $0x1d0] sm:$0xff] }
 0x269   : > { %v1182_v27 = vadd.f32 %v1181_v25, %v1162_v24  ;;  %1594 = vmatpush.msrb.mxu2 %v744_v23  ;;  %v733_v23 = vld [vmem:[#allocation8 + $0x178] sm:$0xff] }
 0x26a   : > { %v1395_v26 = vrot.slane %v1270_v18, 4 }
 0x26b   : > { %1186 = vst [vmem:[#allocation3 + $0x8] sm:$0xf] %v1182_v27  ;;  %v742_v27 = vld [vmem:[#allocation8 + $0x1c0] sm:$0xff] }
 0x26c   : > { %1401 = vst [vmem:[#allocation3 + $0x10] sm:$0xf0] %v1395_v26  ;;  %v708_v26 = vld [vmem:[#allocation8 + $0xb0] sm:$0xff]  ;;  %1595 = vmatpush.msrb.mxu2 %v742_v27  ;;  %v722_v27 = vld [vmem:[#allocation8 + $0x120] sm:$0xff] }
 0x271   : > { %v1349_v32 = vpop.f32.mrf.mxu1 }
 0x273   : > { %v2436_v37 = vld [vmem:[#allocation3 + $0x10] sm:$0xff] }
 0x277   : > { %v1329_v34 = vpop.f32.mrf.mxu0 }
 0x281   : > { %v1309_v29 = vpop.f32.mrf.mxu3 }
 0x288   : > { %v1289_v33 = vpop.f32.mrf.mxu2 }
 0x289   : > { %v1310_v35 = vadd.f32 %v1309_v29, %v1289_v33  ;;  %v1389_v41 = vpop.f32.mrf.mxu0  ;;  %v706_v33 = vld [vmem:[#allocation8 + $0xa0] sm:$0xff] }
 0x28b   : > { %v1330_v36 = vadd.f32 %v1329_v34, %v1310_v35  ;;  %v740_v34 = vld [vmem:[#allocation8 + $0x1b0] sm:$0xff] }
 0x28c   : > { %v704_v35 = vld [vmem:[#allocation8 + $0x90] sm:$0xff]  ;;  %1596 = vmatpush.msrb.mxu2 %v740_v34 }
 0x28d   : > { %v1396_v31 = vrot.slane %v1330_v36, 4  ;;  %v738_v36 = vld [vmem:[#allocation8 + $0x1a0] sm:$0xff]  ;;  %v720_v34 = vld [vmem:[#allocation8 + $0x110] sm:$0xff] }
 0x28e   : > { %1597 = vmatpush.msrb.mxu2 %v738_v36  ;;  %v751_v36 = vld [vmem:[#allocation8 + $0x208] sm:$0xff] }
 0x28f   : > { %1402 = vst [vmem:[#allocation3] sm:$0xf0] %v1396_v31 }
 0x296   : > { %v2438_v38 = vld [vmem:[#allocation3] sm:$0xff] }
 0x297   : > { %v1938_v39 = vpack.i.bf16 %v2438_v38, %v2436_v37 }
 0x299   : > { %1939 = vrot.lane.b32.xlu1 %v1938_v39, %s2083_s23  ;;  %1934 = vrot.lane.b32.xlu0 %v1938_v39, %s2087_s27 }
 0x29a   : > { %1929 = vrot.lane.b32.xlu2 %v1938_v39, %s2084_s24 }
 0x2a1   : > { %1954 = vrot.lane.b32.xlu1 %v1938_v39, %s2085_s17  ;;  %1949 = vrot.lane.b32.xlu0 %v1938_v39, %s2082_s22 }
 0x2a2   : > { %1944 = vrot.lane.b32.xlu2 %v1938_v39, %s2086_s25 }
 0x2a8   : > { %v1369_v40 = vpop.f32.mrf.mxu2 }
 0x2a9   : > { %v1370_v43 = vadd.f32 %v1369_v40, %v1349_v32  ;;  %1959 = vrot.lane.b32.xlu0 %v1938_v39, %s2089_s29 }
 0x2aa   : > { %1964 = vrot.lane.b32.xlu2 %v1938_v39, %s2088_s28  ;;  %v736_v39 = vld [vmem:[#allocation8 + $0x190] sm:$0xff] }
 0x2ab   : > { %v1390_v44 = vadd.f32 %v1389_v41, %v1370_v43  ;;  %v700_v41 = vld [vmem:[#allocation8 + $0x70] sm:$0xff]  ;;  %1598 = vmatpush.msrb.mxu2 %v736_v39  ;;  %v734_v43 = vld [vmem:[#allocation8 + $0x180] sm:$0xff]  ;;  %v723_v39 = vld [vmem:[#allocation8 + $0x128] sm:$0xff] }
 0x2ad   : > { %v1397_v45 = vrot.slane %v1390_v44, 4  ;;  %1599 = vmatpush.msrb.mxu2 %v734_v43 }
 0x2af   : > { %1403 = vst [vmem:[#allocation3 + $0x8] sm:$0xf0] %v1397_v45 }
 0x2b6   : > { %v2450_v46 = vld [vmem:[#allocation3 + $0x8] sm:$0xff] }
 0x2b7   : > { %1480 = vrot.lane.b32.xlu1 %v2450_v46, %s2087_s27  ;;  %1469 = vrot.lane.b32.xlu0 %v2450_v46, %s2083_s23  ;;  %s426_s23 = scalar_lea.vmem %s2570_s10, %s1807_s26 }
 0x2b8   : > { %1491 = vrot.lane.b32.xlu2 %v2450_v46, %s2084_s24 }
 0x2bf   : > { %1458 = vrot.lane.b32.xlu1 %v2450_v46, %s2086_s25  ;;  %1436 = vrot.lane.b32.xlu0 %v2450_v46, %s2085_s17 }
 0x2c0   : > { %1447 = vrot.lane.b32.xlu2 %v2450_v46, %s2082_s22 }
 0x2c7   : > { %1425 = vrot.lane.b32.xlu1 %v2450_v46, %s2089_s29  ;;  %1500 = vperm.xlu0 %1968, %v430_v14   ;;  %v737_v14 = vld [vmem:[#allocation8 + $0x198] sm:$0xff] }
 0x2c8   : > { %1414 = vrot.lane.b32.xlu2 %v2450_v46, %s2088_s28 }
 0x2f4   : > { %v1930_v47 = vpop.permute.xlu2 %1929 }
 0x2f5   : > { %v1932_v48 = vunpack.i.h.bf16 %v1930_v47  ;;  %v1931_v49 = vunpack.i.l.bf16 %v1930_v47  ;;  %v698_v47 = vld [vmem:[#allocation8 + $0x60] sm:$0xff] }
 0x2f7   : > { %v1493_v30 = vsel %vm922_vm1, %v1931_v49, %v1932_v48 }
 0x2f8   : > { %1513 = vmatpush.msrb.mxu3 %v1493_v30  ;;  %v696_v30 = vld [vmem:[#allocation8 + $0x50] sm:$0xff] }
 0x2fc   : > { %v2469_v50 = vpop.permute.xlu2 %1944 }
 0x2fd   : > { %v1947_v57 = vunpack.i.h.bf16 %v2469_v50  ;;  %v1946_v59 = vunpack.i.l.bf16 %v2469_v50  ;;  %v694_v50 = vld [vmem:[#allocation8 + $0x40] sm:$0xff] }
 0x2ff   : > { %v1460_v63 = vsel %vm886_vm4, %v1946_v59, %v1947_v57  ;;  %v715_v59 = vld [vmem:[#allocation8 + $0xe8] sm:$0xff] }
 0x304   : > { %v2471_v51 = vpop.permute.xlu2 %1964 }
 0x305   : > { %v1967_v8 = vunpack.i.h.bf16 %v2471_v51  ;;  %v1966_v9 = vunpack.i.l.bf16 %v2471_v51  ;;  %v713_v51 = vld [vmem:[#allocation8 + $0xd8] sm:$0xff] }
 0x307   : > { %v1416_v13 = vsel %vm838_vm8, %v1966_v9, %v1967_v8  ;;  %v695_v9 = vld [vmem:[#allocation8 + $0x48] sm:$0xff] }
 0x30b   : > { %v2473_v28 = vpop.permute.xlu1 %1939  ;;  %v1935_v52 = vpop.permute.xlu0 %1934 }
 0x30c   : > { %v1942_v53 = vunpack.i.h.bf16 %v2473_v28  ;;  %v1941_v54 = vunpack.i.l.bf16 %v2473_v28  ;;  %v1937_v55 = vunpack.i.h.bf16 %v1935_v52  ;;  %v1936_v56 = vunpack.i.l.bf16 %v1935_v52 }
 0x30e   : > { %v1482_v60 = vsel %vm910_vm2, %v1936_v56, %v1937_v55  ;;  %v1471_v61 = vsel %vm898_vm3, %v1941_v54, %v1942_v53  ;;  %v692_v54 = vld [vmem:[#allocation8 + $0x30] sm:$0xff]  ;;  %v717_v56 = vld [vmem:[#allocation8 + $0xf8] sm:$0xff] }
 0x30f   : > { %1514 = vmatpush.msrb.mxu3 %v1482_v60  ;;  %v754_v60 = vld [vmem:[#allocation8 + $0x220] sm:$0xff] }
 0x311   : > { %1515 = vmatpush.msrb.mxu3 %v1471_v61  ;;  %v752_v61 = vld [vmem:[#allocation8 + $0x210] sm:$0xff] }
 0x312   : > { %v1492_v62 = vpop.permute.xlu2 %1491 }
 0x313   : > { %v1494_v0 = vsel %vm922_vm1, %v1932_v48, %v1492_v62  ;;  %1553 = vmatpush.msrb.mxu0 %v1492_v62  ;;  %v2487_v1 = vpop.permute.xlu1 %1954  ;;  %v2489_v2 = vpop.permute.xlu0 %1949  ;;  %1516 = vmatpush.msrb.mxu3 %v1460_v63  ;;  %v732_v48 = vld [vmem:[#allocation8 + $0x170] sm:$0xff]  ;;  %v711_v62 = vld [vmem:[#allocation8 + $0xc8] sm:$0xff]  ;;  %v709_v63 = vld [vmem:[#allocation8 + $0xb8] sm:$0xff] }
 0x314   : > { %1533 = vmatpush.msrb.mxu1 %v1494_v0  ;;  %v1957_v3 = vunpack.i.h.bf16 %v2487_v1  ;;  %v1956_v4 = vunpack.i.l.bf16 %v2487_v1  ;;  %v1952_v5 = vunpack.i.h.bf16 %v2489_v2  ;;  %v1951_v58 = vunpack.i.l.bf16 %v2489_v2  ;;  %1600 = vmatpush.msrb.mxu2 %v732_v48  ;;  %v707_v0 = vld [vmem:[#allocation8 + $0xa8] sm:$0xff]  ;;  %v705_v2 = vld [vmem:[#allocation8 + $0x98] sm:$0xff] }
 0x315   : > { %v747_v1 = vld [vmem:[#allocation8 + $0x1e8] sm:$0xff] }
 0x316   : > { %v1449_v6 = vsel %vm874_vm5, %v1951_v58, %v1952_v5  ;;  %v1438_v7 = vsel %vm862_vm6, %v1956_v4, %v1957_v3  ;;  %v703_v4 = vld [vmem:[#allocation8 + $0x88] sm:$0xff]  ;;  %v701_v58 = vld [vmem:[#allocation8 + $0x78] sm:$0xff] }
 0x317   : > { %1517 = vmatpush.msrb.mxu3 %v1449_v6  ;;  %v741_v6 = vld [vmem:[#allocation8 + $0x1b8] sm:$0xff] }
 0x319   : > { %1518 = vmatpush.msrb.mxu3 %v1438_v7  ;;  %v699_v7 = vld [vmem:[#allocation8 + $0x68] sm:$0xff] }
 0x31a   : > { %v1448_v31 = vpop.permute.xlu2 %1447 }
 0x31b   : > { %v2501_v42 = vpop.permute.xlu0 %1959  ;;  %v1450_v45 = vsel %vm874_vm5, %v1952_v5, %v1448_v31  ;;  %v743_v5 = vld [vmem:[#allocation8 + $0x1c8] sm:$0xff] }
 0x31c   : > { %v1962_v10 = vunpack.i.h.bf16 %v2501_v42  ;;  %v1961_v11 = vunpack.i.l.bf16 %v2501_v42  ;;  %v697_v42 = vld [vmem:[#allocation8 + $0x58] sm:$0xff] }
 0x31e   : > { %v1427_v12 = vsel %vm850_vm7, %v1961_v11, %v1962_v10  ;;  %v730_v11 = vld [vmem:[#allocation8 + $0x160] sm:$0xff] }
 0x31f   : > { %1519 = vmatpush.msrb.mxu3 %v1427_v12  ;;  %v688_v12 = vld [vmem:[#allocation8 + $0x10] sm:$0xff]  ;;  %1601 = vmatpush.msrb.mxu2 %v730_v11 }
 0x321   : > { %1520 = vmatpush.msrb.mxu3 %v1416_v13  ;;  %v693_v13 = vld [vmem:[#allocation8 + $0x38] sm:$0xff] }
 0x322   : > { %v1415_v28 = vpop.permute.xlu2 %1414 }
 0x323   : > { %1521 = vmatpush.msrb.mxu3 %v2436_v37  ;;  %v702_v37 = vld [vmem:[#allocation8 + $0x80] sm:$0xff] }
 0x324   : > { %1826 = vmatmul.msk.f32.vlgmr.msrb.gmra.mxu3 %vm933_vm9, %v2519_v15 }
 0x325   : > { %1572 = vmatpush.msra.mxu3 %v716_v16  ;;  %v686_v16 = vld [vmem:[#allocation8] sm:$0xff] }
 0x327   : > { %1573 = vmatpush.msra.mxu3 %v714_v17  ;;  %v691_v17 = vld [vmem:[#allocation8 + $0x28] sm:$0xff] }
 0x329   : > { %v1481_v24 = vpop.permute.xlu1 %1480  ;;  %v1470_v18 = vpop.permute.xlu0 %1469  ;;  %1574 = vmatpush.msra.mxu3 %v712_v20  ;;  %v726_v20 = vld [vmem:[#allocation8 + $0x140] sm:$0xff] }
 0x32a   : > { %1554 = vmatpush.msrb.mxu0 %v1481_v24  ;;  %v1483_v25 = vsel %vm910_vm2, %v1937_v55, %v1481_v24  ;;  %v1472_v29 = vsel %vm898_vm3, %v1942_v53, %v1470_v18  ;;  %v1417_v55 = vsel %vm838_vm8, %v1967_v8, %v1415_v28  ;;  %v690_v8 = vld [vmem:[#allocation8 + $0x20] sm:$0xff]  ;;  %v724_v24 = vld [vmem:[#allocation8 + $0x130] sm:$0xff] }
 0x32b   : > { %1534 = vmatpush.msrb.mxu1 %v1483_v25  ;;  %1575 = vmatpush.msra.mxu3 %v710_v22  ;;  %v757_v22 = vld [vmem:[#allocation8 + $0x238] sm:$0xff]  ;;  %v731_v25 = vld [vmem:[#allocation8 + $0x168] sm:$0xff] }
 0x32c   : > { %1555 = vmatpush.msrb.mxu0 %v1470_v18  ;;  %v687_v18 = vld [vmem:[#allocation8 + $0x8] sm:$0xff] }
 0x32d   : > { %1535 = vmatpush.msrb.mxu1 %v1472_v29  ;;  %1576 = vmatpush.msra.mxu3 %v708_v26  ;;  %v755_v26 = vld [vmem:[#allocation8 + $0x228] sm:$0xff]  ;;  %v729_v29 = vld [vmem:[#allocation8 + $0x158] sm:$0xff] }
 0x32f   : > { %1577 = vmatpush.msra.mxu3 %v706_v33  ;;  %v753_v33 = vld [vmem:[#allocation8 + $0x218] sm:$0xff] }
 0x331   : > { %v1459_v32 = vpop.permute.xlu1 %1458  ;;  %1578 = vmatpush.msra.mxu3 %v704_v35  ;;  %v1437_v44 = vpop.permute.xlu0 %1436  ;;  %v727_v35 = vld [vmem:[#allocation8 + $0x148] sm:$0xff] }
 0x332   : > { %1556 = vmatpush.msrb.mxu0 %v1459_v32  ;;  %v1461_v40 = vsel %vm886_vm4, %v1947_v57, %v1459_v32  ;;  %v1439_v49 = vsel %vm862_vm6, %v1957_v3, %v1437_v44  ;;  %v756_v57 = vld [vmem:[#allocation8 + $0x230] sm:$0xff]  ;;  %v745_v3 = vld [vmem:[#allocation8 + $0x1d8] sm:$0xff] }
 0x333   : > { %1536 = vmatpush.msrb.mxu1 %v1461_v40  ;;  %1579 = vmatpush.msra.mxu3 %v702_v37  ;;  %v725_v37 = vld [vmem:[#allocation8 + $0x138] sm:$0xff] }
 0x334   : > { %1557 = vmatpush.msrb.mxu0 %v1448_v31  ;;  %v718_v31 = vld [vmem:[#allocation8 + $0x100] sm:$0xff]  ;;  %v721_v32 = vld [vmem:[#allocation8 + $0x118] sm:$0xff] }
 0x335   : > { %1537 = vmatpush.msrb.mxu1 %v1450_v45  ;;  %1580 = vmatpush.msra.mxu3 %v700_v41  ;;  %v719_v41 = vld [vmem:[#allocation8 + $0x108] sm:$0xff] }
 0x336   : > { %1558 = vmatpush.msrb.mxu0 %v1437_v44 }
 0x337   : > { %1538 = vmatpush.msrb.mxu1 %v1439_v49  ;;  %1581 = vmatpush.msra.mxu3 %v698_v47 }
 0x339   : > { %v1426_v52 = vpop.permute.xlu1 %1425  ;;  %1582 = vmatpush.msra.mxu3 %v696_v30  ;;  %v1501_v40 = vpop.permute.xlu0 %1500 }
 0x33a   : > { %1559 = vmatpush.msrb.mxu0 %v1426_v52  ;;  %v1428_v53 = vsel %vm850_vm7, %v1962_v10, %v1426_v52  ;;  %v739_v10 = vld [vmem:[#allocation8 + $0x1a8] sm:$0xff] }
 0x33b   : > { %1539 = vmatpush.msrb.mxu1 %v1428_v53  ;;  %1583 = vmatpush.msra.mxu3 %v694_v50 }
 0x33c   : > { %1560 = vmatpush.msrb.mxu0 %v1415_v28 }
 0x33d   : > { %1540 = vmatpush.msrb.mxu1 %v1417_v55  ;;  %1584 = vmatpush.msra.mxu3 %v692_v54 }
 0x33e   : > { %1561 = vmatpush.msrb.mxu0 %v2450_v46  ;;  %v750_v46 = vld [vmem:[#allocation8 + $0x200] sm:$0xff] }
 0x33f   : > { %1541 = vmatpush.msrb.mxu1 %v2438_v38  ;;  %1828 = vmatmul.msk.f32.vlgmr.msrb.gmra.mxu0 %vm933_vm9, %v2519_v15  ;;  %v749_v38 = vld [vmem:[#allocation8 + $0x1f8] sm:$0xff] }
 0x340   : > { %1827 = vmatmul.msk.f32.vlgmr.msrb.gmra.mxu1 %vm933_vm9, %v2519_v15  ;;  %1632 = vmatpush.msra.mxu0 %v717_v56  ;;  %v728_v15 = vld [vmem:[#allocation8 + $0x150] sm:$0xff] }
 0x341   : > { %1624 = vmatpush.msra.mxu1 %v756_v57  ;;  %1585 = vmatpush.msra.mxu3 %v690_v8 }
 0x342   : > { %1633 = vmatpush.msra.mxu0 %v715_v59  ;;  %1602 = vmatpush.msrb.mxu2 %v728_v15 }
 0x343   : > { %1625 = vmatpush.msra.mxu1 %v754_v60  ;;  %1586 = vmatpush.msra.mxu3 %v688_v12 }
 0x344   : > { %1634 = vmatpush.msra.mxu0 %v713_v51  ;;  %1603 = vmatpush.msrb.mxu2 %v726_v20 }
 0x345   : > { %1626 = vmatpush.msra.mxu1 %v752_v61  ;;  %1587 = vmatpush.msra.mxu3 %v686_v16 }
 0x346   : > { %1635 = vmatpush.msra.mxu0 %v711_v62  ;;  %1604 = vmatpush.msrb.mxu2 %v724_v24 }
 0x347   : > { %1627 = vmatpush.msra.mxu1 %v750_v46  ;;  %1684 = vmatpush.msrb.mxu3 %v757_v22 }
 0x348   : > { %1636 = vmatpush.msra.mxu0 %v709_v63  ;;  %1605 = vmatpush.msrb.mxu2 %v722_v27 }
 0x349   : > { %1652 = vmatpush.msrb.mxu1 %v749_v38  ;;  %1685 = vmatpush.msrb.mxu3 %v755_v26 }
 0x34a   : > { %1637 = vmatpush.msra.mxu0 %v707_v0  ;;  %1606 = vmatpush.msrb.mxu2 %v720_v34 }
 0x34b   : > { %1653 = vmatpush.msrb.mxu1 %v747_v1  ;;  %1686 = vmatpush.msrb.mxu3 %v753_v33 }
 0x34c   : > { %1638 = vmatpush.msra.mxu0 %v705_v2  ;;  %1607 = vmatpush.msrb.mxu2 %v718_v31 }
 0x34d   : > { %1654 = vmatpush.msrb.mxu1 %v745_v3  ;;  %1687 = vmatpush.msrb.mxu3 %v751_v36 }
 0x34e   : > { %1639 = vmatpush.msra.mxu0 %v703_v4 }
 0x34f   : > { %1655 = vmatpush.msrb.mxu1 %v743_v5 }
 0x350   : > { %1640 = vmatpush.msra.mxu0 %v701_v58 }
 0x351   : > { %1656 = vmatpush.msrb.mxu1 %v741_v6 }
 0x352   : > { %1641 = vmatpush.msra.mxu0 %v699_v7 }
 0x353   : > { %1657 = vmatpush.msrb.mxu1 %v739_v10 }
 0x354   : > { %1642 = vmatpush.msra.mxu0 %v697_v42 }
 0x355   : > { %1658 = vmatpush.msrb.mxu1 %v737_v14 }
 0x356   : > { %1643 = vmatpush.msra.mxu0 %v695_v9 }
 0x357   : > { %1659 = vmatpush.msrb.mxu1 %v735_v19 }
 0x358   : > { %1644 = vmatpush.msra.mxu0 %v693_v13 }
 0x359   : > { %1660 = vmatpush.msrb.mxu1 %v733_v23 }
 0x35a   : > { %1645 = vmatpush.msra.mxu0 %v691_v17 }
 0x35b   : > { %1661 = vmatpush.msrb.mxu1 %v731_v25 }
 0x35c   : > { %1646 = vmatpush.msra.mxu0 %v689_v21 }
 0x35d   : > { %1662 = vmatpush.msrb.mxu1 %v729_v29 }
 0x35e   : > { %1647 = vmatpush.msra.mxu0 %v687_v18 }
 0x35f   : > { %1663 = vmatpush.msrb.mxu1 %v727_v35 }
 0x361   : > { %1664 = vmatpush.msrb.mxu1 %v725_v37 }
 0x363   : > { %1665 = vmatpush.msrb.mxu1 %v723_v39 }
 0x365   : > { %1666 = vmatpush.msrb.mxu1 %v721_v32 }
 0x367   : > { %1667 = vmatpush.msrb.mxu1 %v719_v41 }
 0x3a7   : > { %v1523_v43 = vpop.f32.mrf.mxu3 }
 0x3a8   : > { %v1524_v44 = vadd.f32 %v1523_v43, %v1501_v40 }
 0x3aa   : > { %v1566_v45 = vmax.f32 %v1524_v44, 0.0 }
 0x3ac   : > { %1588 = vmatmul.f32.vlgmr.msra.gmra.mxu3 %v1566_v45  ;;  %1648 = vmatmul.f32.vlgmr.msra.gmra.mxu0 %v1566_v45 }
 0x3bc   : > { %v1563_v47 = vpop.f32.mrf.mxu0 }
 0x3bd   : > { %v1564_v48 = vadd.f32 %v1563_v47, %v1501_v40  ;;  %v1543_v49 = vpop.f32.mrf.mxu1 }
 0x3be   : > { %v1544_v30 = vadd.f32 %v1543_v49, %v1501_v40 }
 0x3bf   : > { %v1568_v50 = vmax.f32 %v1564_v48, 0.0 }
 0x3c0   : > { %v1567_v28 = vmax.f32 %v1544_v30, 0.0 }
 0x3c1   : > { %1829 = vmatmul.msk.f32.vlgmr.msra.gmra.mxu1 %vm1000_vm10, %v1568_v50  ;;  %1830 = vmatmul.msk.f32.vlgmr.msrb.gmra.mxu3 %vm1000_vm10, %v1568_v50 }
 0x3c2   : > { %1608 = vmatmul.f32.vlgmr.msrb.gmra.mxu2 %v1567_v28 }
 0x3c9   : > { %1668 = vmatmul.f32.vlgmr.msrb.gmra.mxu1 %v1567_v28 }
 0x429   : > { %v1649_v55 = vpop.f32.mrf.mxu0 }
 0x42f   : > { %v1589_v52 = vpop.f32.mrf.mxu3 }
 0x43e   : > { %v1629_v53 = vpop.f32.mrf.mxu1 }
 0x444   : > { %v1689_v60 = vpop.f32.mrf.mxu3 }
 0x445   : > { %v1609_v54 = vpop.f32.mrf.mxu2 }
 0x446   : > { %v1669_v56 = vpop.f32.mrf.mxu1  ;;  %v1610_v57 = vadd.f32 %v1609_v54, %v1589_v52 }
 0x447   : > { %v1670_v59 = vadd.f32 %v1669_v56, %v1649_v55 }
 0x448   : > { %v1630_v61 = vadd.f32 %v1629_v53, %v1610_v57 }
 0x449   : > { %v1690_v51 = vadd.f32 %v1689_v60, %v1670_v59 }
 0x44b   : > { %v1694_v62 = vrot.slane %v1690_v51, 4 }
 0x44d   : > { %v1695_v46 = vsel %vm1202_vm11, %v1630_v61, %v1694_v62 }
 0x44e   : > { %1697 = vst [vmem:[%s426_s23] sm:$0xff] %v1695_v46 }
 0x44f PF: > { %s22_s13 = sadd.s32 1, %s2073_s13  }
 0x450   : > { %p19_p7 = scmp.ge.s32.totalorder %s22_s13, 4  }
 0x452   :  { %21 = sbr.rel (!%p19_p7) target bundleno = 2 (0x2), region = 107 }
 0x457   :  { %1719 = vsyncpa [#allocation5], 1 }
 0x458   :  { %1721 = vsyncpa [#allocation5 + $0x1], 1 }
 0x459   :  { %1722 = vsyncpa [#allocation7], 1 }

</bundles_post_ra>
